<compile_context>
chip_gen: v5e
topology: v5e:2x2
jax: 0.10.0
libtpu: 0.0.40
codegen_flags: <defaults>
</compile_context>

<pallas_src>
import math
import numpy as np

import jax
import jax.numpy as jnp
from jax import lax
from jax.experimental import pallas as pl
from jax.experimental.pallas import tpu as pltpu


# ---------------------------------------------------------------------------
# Mask construction (faithful port of Transformer.generate_window_mask)
# ---------------------------------------------------------------------------
def generate_window_mask(size, kernel_size):
    assert kernel_size % 2 == 1
    pad = kernel_size // 2
    cols = [-math.inf] * pad + list(range(size)) + [-math.inf] * pad
    pad_cols = [-math.inf] * len(cols)
    rows = [pad_cols]
    for i in range(size):
        rows.append([i * size + v for v in cols])
    rows.append(pad_cols)
    rows = [[int(i) if i >= 0 else -1 for i in row] for row in rows]
    grid = np.array(rows, dtype=np.int64)
    mask = np.full((size ** 2, size ** 2), -np.inf, dtype=np.float32)
    for y in range(size):
        for x in range(size):
            i_row = y * size + x
            idx = grid[y:y + kernel_size, x:x + kernel_size].flatten()
            for j in idx:
                if j >= 0:
                    mask[i_row, j] = 0.0
    return mask


# ---------------------------------------------------------------------------
# In-kernel helpers
# ---------------------------------------------------------------------------
def _layer_norm(x, g, b, eps=1e-5):
    mu = jnp.mean(x, axis=-1, keepdims=True)
    xc = x - mu
    var = jnp.mean(xc * xc, axis=-1, keepdims=True)
    return xc * lax.rsqrt(var + eps) * g + b


def _gelu(x):
    # TODO(synk): PyTorch F.gelu / nn.GELU default to the exact erf form; tanh
    # approximation used here (erf has no guaranteed Mosaic lowering). ~1e-3 diff.
    c = math.sqrt(2.0 / math.pi)
    return 0.5 * x * (1.0 + jnp.tanh(c * (x + 0.044715 * x * x * x)))


def _mm(a, b):
    # (m, k) @ (k, n) on the MXU, f32 accumulation.
    return lax.dot_general(a, b, (((1,), (0,)), ((), ())),
                           preferred_element_type=jnp.float32)


# ---------------------------------------------------------------------------
# Kernel: one grid step = (one batch element, one encoder layer)
# ---------------------------------------------------------------------------
def make_kernel(num_layers, num_heads, embed_dim, seq_len):
    D, H, L = embed_dim, num_heads, num_layers
    hd = D // H
    bf16 = jnp.bfloat16

    def kernel(x_ref, mask_ref,
               n1g_ref, n1b_ref, wqkv_ref, bqkv_ref, wo_ref, bo_ref,
               n2g_ref, n2b_ref, w1_ref, b1_ref, w2_ref, b2_ref,
               mg_ref, mb_ref, mw1_ref, mb1_ref, mw2_ref, mb2_ref,
               o_ref,
               h_ref, qkv_ref, ctx_ref):
        layer = pl.program_id(1)

        # Residual stream accumulator: initialize once per batch element.
        @pl.when(layer == 0)
        def _():
            h_ref[...] = x_ref[...]

        h = h_ref[...]                         # (S, D) f32
        mask = mask_ref[...]                   # (S, S) additive window mask

        # ----- self-attention sub-block (norm_first, dropout = 0) -----
        y = _layer_norm(h, n1g_ref[...], n1b_ref[...])                     # (S, D)
        # Fused lane-dense QKV projection; 1/sqrt(hd) is pre-folded into the
        # Q columns of wqkv/bqkv wrapper-side (no per-tensor scale multiply).
        qkv_ref[...] = _mm(y.astype(bf16), wqkv_ref[...]) + bqkv_ref[...]  # (S, 3D)
        q = jnp.stack([qkv_ref[:, i * hd:(i + 1) * hd] for i in range(H)], axis=0)
        k = jnp.stack([qkv_ref[:, D + i * hd:D + (i + 1) * hd] for i in range(H)], axis=0)
        v = jnp.stack([qkv_ref[:, 2 * D + i * hd:2 * D + (i + 1) * hd] for i in range(H)], axis=0)

        s = jnp.einsum('hqe,hke->hqk', q.astype(bf16), k.astype(bf16),
                       preferred_element_type=jnp.float32)                 # (H, S, S)
        s = s + mask                                                       # broadcast over H
        s = s - jnp.max(s, axis=-1, keepdims=True)
        p = jnp.exp(s)
        p = p * pl.reciprocal(jnp.sum(p, axis=-1, keepdims=True), approx=True)
        ctx = jnp.einsum('hqk,hke->hqe', p.astype(bf16), v.astype(bf16),
                         preferred_element_type=jnp.float32)               # (H, S, hd)
        # Assemble the head-merged (S, D) slab in VMEM, then one lane-dense
        # output projection with contraction depth D (no (H,S,D) intermediate).
        for i in range(H):
            ctx_ref[:, i * hd:(i + 1) * hd] = ctx[i]
        attn = _mm(ctx_ref[...].astype(bf16), wo_ref[...]) + bo_ref[...]   # (S, D)
        h = h + attn

        # ----- feed-forward sub-block (dim_feedforward == D, dropout = 0) -----
        y = _layer_norm(h, n2g_ref[...], n2b_ref[...])
        ff = _mm(y.astype(bf16), w1_ref[...]) + b1_ref[...]
        ff = _gelu(ff)
        ff = _mm(ff.astype(bf16), w2_ref[...]) + b2_ref[...]
        h = h + ff
        # TODO(synk): on v5e (lowest HBM BW) carrying h in bf16 halves residual
        # traffic when memory-bound; kept f32 here for accuracy at toy sizes.
        h_ref[...] = h

        # ----- finalize on the last layer: outer residuals + outer MLP -----
        @pl.when(layer == L - 1)
        def _():
            # x = x + attn_encoder(x)  (DropPath is identity in eval mode)
            x1 = x_ref[...] + h
            y2 = _layer_norm(x1, mg_ref[...], mb_ref[...])
            y2 = _mm(y2.astype(bf16), mw1_ref[...]) + mb1_ref[...]
            y2 = _gelu(y2)
            y2 = _mm(y2.astype(bf16), mw2_ref[...]) + mb2_ref[...]
            o_ref[...] = (x1 + y2).astype(o_ref.dtype)

    return kernel


# ---------------------------------------------------------------------------
# Parameter preparation (wrapper-side layout plumbing, PyTorch-native -> kernel)
# ---------------------------------------------------------------------------
def prepare_params(params, D, H):
    hd = D // H
    scale = 1.0 / math.sqrt(hd)
    bf = jnp.bfloat16

    def stack(fn):
        return jnp.stack([fn(p) for p in params["layers"]], axis=0)

    def wqkv_fn(p):
        w = p["in_proj_w"]                                    # (3D, D) rows [q|k|v]
        w = jnp.concatenate([w[0:D] * scale, w[D:]], axis=0)  # fold 1/sqrt(hd) into q
        return w.T                                            # (D, 3D), head-major cols

    def bqkv_fn(p):
        b = p["in_proj_b"]
        return jnp.concatenate([b[0:D] * scale, b[D:]], axis=0).reshape(1, 3 * D)

    n1g = stack(lambda p: p["norm1_w"].reshape(1, D))
    n1b = stack(lambda p: p["norm1_b"].reshape(1, D))
    wqkv = stack(wqkv_fn).astype(bf)                          # (L, D, 3D)
    bqkv = stack(bqkv_fn)                                     # (L, 1, 3D)
    wo = stack(lambda p: p["out_proj_w"].T).astype(bf)        # (L, D, D)
    bo = stack(lambda p: p["out_proj_b"].reshape(1, D))
    n2g = stack(lambda p: p["norm2_w"].reshape(1, D))
    n2b = stack(lambda p: p["norm2_b"].reshape(1, D))
    w1 = stack(lambda p: p["lin1_w"].T).astype(bf)            # (L, D, Dff)
    b1 = stack(lambda p: p["lin1_b"].reshape(1, -1))
    w2 = stack(lambda p: p["lin2_w"].T).astype(bf)            # (L, Dff, D)
    b2 = stack(lambda p: p["lin2_b"].reshape(1, -1))

    m = params["mlp"]
    mg = m["ln_w"].reshape(1, D)
    mb = m["ln_b"].reshape(1, D)
    mw1 = m["fc1_w"].T.astype(bf)                             # (D, 4D)
    mb1 = m["fc1_b"].reshape(1, -1)
    mw2 = m["fc2_w"].T.astype(bf)                             # (4D, D)
    mb2 = m["fc2_b"].reshape(1, -1)

    return (n1g, n1b, wqkv, bqkv, wo, bo, n2g, n2b,
            w1, b1, w2, b2, mg, mb, mw1, mb1, mw2, mb2)


# ---------------------------------------------------------------------------
# Wrapper
# ---------------------------------------------------------------------------
def transformer_forward(x, mask, params, *, num_layers, num_heads):
    B, S, D = x.shape
    H, L = num_heads, num_layers
    assert D % H == 0

    # Shared (S, S) window mask; every row must have at least one unmasked
    # entry or softmax would NaN (host-side insurance).
    m = np.asarray(mask, dtype=np.float32)
    assert m.shape == (S, S)
    assert (m == 0.0).any(axis=1).all(), "window mask has a fully -inf row"
    mask = jnp.asarray(m)

    prepped = prepare_params(params, D, H)
    kernel = make_kernel(L, H, D, S)

    Dff = params["layers"][0]["lin1_w"].shape[0]   # dim_feedforward == D
    Dm = params["mlp"]["fc1_w"].shape[0]           # 4 * D

    def per_layer(*tail):   # stacked-over-layers params, streamed by layer index
        return pl.BlockSpec((None,) + tuple(tail), lambda b, l: (l,) + (0,) * len(tail))

    def shared(*shape):     # outer-MLP params, same block every grid step
        return pl.BlockSpec(tuple(shape), lambda b, l: (0,) * len(shape))

    in_specs = [
        pl.BlockSpec((None, S, D), lambda b, l: (b, 0, 0)),   # x (per batch elem)
        pl.BlockSpec((S, S), lambda b, l: (0, 0)),            # window mask (shared)
        per_layer(1, D), per_layer(1, D),                     # norm1 gamma/beta
        per_layer(D, 3 * D), per_layer(1, 3 * D),             # fused Wqkv / bqkv
        per_layer(D, D), per_layer(1, D),                     # Wo / bo
        per_layer(1, D), per_layer(1, D),                     # norm2 gamma/beta
        per_layer(D, Dff), per_layer(1, Dff),                 # FFN lin1
        per_layer(Dff, D), per_layer(1, D),                   # FFN lin2
        shared(1, D), shared(1, D),                           # outer MLP LN
        shared(D, Dm), shared(1, Dm),                         # outer MLP fc1
        shared(Dm, D), shared(1, D),                          # outer MLP fc2
    ]

    out = pl.pallas_call(
        kernel,
        out_shape=jax.ShapeDtypeStruct((B, S, D), jnp.float32),
        grid_spec=pltpu.PrefetchScalarGridSpec(
            num_scalar_prefetch=0,
            grid=(B, L),                       # batch outer, layer (carry) inner
            in_specs=in_specs,
            out_specs=pl.BlockSpec((None, S, D), lambda b, l: (b, 0, 0)),
            scratch_shapes=[
                pltpu.VMEM((S, D), jnp.float32),       # residual stream h
                pltpu.VMEM((S, 3 * D), jnp.float32),   # fused QKV slab
                pltpu.VMEM((S, D), jnp.float32),       # head-merged ctx slab
            ]),
        compiler_params=pltpu.CompilerParams(
            # batch axis parallel (2 TCs on v7x), layer axis is a carried loop
            dimension_semantics=("parallel", "arbitrary"),
            # explicit budget; comfortably below v7x's 64 MiB physical VMEM
            vmem_limit_bytes=32 * 1024 * 1024),
    )(x, mask, *prepped)
    return out


# ---------------------------------------------------------------------------
# Deterministic synthetic parameters in PyTorch-native shapes
# (nn.TransformerEncoderLayer: d_model=D, nhead=H, dim_feedforward=D, plus the
#  outer MLP with 4D hidden)
# ---------------------------------------------------------------------------
def init_params(key, embed_dim, num_layers):
    D = embed_dim
    keys = jax.random.split(key, num_layers * 8 + 4)
    it = iter(range(len(keys)))

    def rnd(shape, scale=0.02):
        return (scale * jax.random.normal(keys[next(it)], shape)).astype(jnp.float32)

    layers = []
    for _ in range(num_layers):
        layers.append(dict(
            norm1_w=jnp.ones((D,), jnp.float32), norm1_b=jnp.zeros((D,), jnp.float32),
            in_proj_w=rnd((3 * D, D)), in_proj_b=rnd((3 * D,)),
            out_proj_w=rnd((D, D)), out_proj_b=rnd((D,)),
            norm2_w=jnp.ones((D,), jnp.float32), norm2_b=jnp.zeros((D,), jnp.float32),
            lin1_w=rnd((D, D)), lin1_b=rnd((D,)),
            lin2_w=rnd((D, D)), lin2_b=rnd((D,)),
        ))
    mlp = dict(
        ln_w=jnp.ones((D,), jnp.float32), ln_b=jnp.zeros((D,), jnp.float32),
        fc1_w=rnd((4 * D, D)), fc1_b=rnd((4 * D,)),
        fc2_w=rnd((D, 4 * D)), fc2_b=rnd((D,)),
    )
    return dict(layers=layers, mlp=mlp)


if __name__ == "__main__":
    embed_dim, num_heads, num_layers = 32, 4, 2
    mask_size, mask_kernel_size = 4, 3
    B = 2
    S = mask_size ** 2  # 16

    key = jax.random.PRNGKey(0)
    kx, kp = jax.random.split(key)
    x = jax.random.normal(kx, (B, S, embed_dim), dtype=jnp.float32)
    mask = generate_window_mask(mask_size, mask_kernel_size)
    params = init_params(kp, embed_dim, num_layers)

    out = transformer_forward(x, mask, params,
                              num_layers=num_layers, num_heads=num_heads)
    jax.block_until_ready(out)
    assert out.shape == (B, S, embed_dim)
    assert bool(jnp.all(jnp.isfinite(out)))
    print("KERNEL_OK")
</pallas_src>

<mosaic_0001>
module attributes {stable_mosaic.version = 11 : i64} {
  func.func @kernel(%arg0: i32, %arg1: i32, %arg2: memref<1x16x32xf32, #tpu.memory_space<vmem>>, %arg3: memref<16x16xf32, #tpu.memory_space<vmem>>, %arg4: memref<1x1x32xf32, #tpu.memory_space<vmem>>, %arg5: memref<1x1x32xf32, #tpu.memory_space<vmem>>, %arg6: memref<1x32x96xbf16, #tpu.memory_space<vmem>>, %arg7: memref<1x1x96xf32, #tpu.memory_space<vmem>>, %arg8: memref<1x32x32xbf16, #tpu.memory_space<vmem>>, %arg9: memref<1x1x32xf32, #tpu.memory_space<vmem>>, %arg10: memref<1x1x32xf32, #tpu.memory_space<vmem>>, %arg11: memref<1x1x32xf32, #tpu.memory_space<vmem>>, %arg12: memref<1x32x32xbf16, #tpu.memory_space<vmem>>, %arg13: memref<1x1x32xf32, #tpu.memory_space<vmem>>, %arg14: memref<1x32x32xbf16, #tpu.memory_space<vmem>>, %arg15: memref<1x1x32xf32, #tpu.memory_space<vmem>>, %arg16: memref<1x32xf32, #tpu.memory_space<vmem>>, %arg17: memref<1x32xf32, #tpu.memory_space<vmem>>, %arg18: memref<32x128xbf16, #tpu.memory_space<vmem>>, %arg19: memref<1x128xf32, #tpu.memory_space<vmem>>, %arg20: memref<128x32xbf16, #tpu.memory_space<vmem>>, %arg21: memref<1x32xf32, #tpu.memory_space<vmem>>, %arg22: memref<1x16x32xf32, #tpu.memory_space<vmem>>, %arg23: memref<16x32xf32, #tpu.memory_space<vmem>>, %arg24: memref<16x96xf32, #tpu.memory_space<vmem>>, %arg25: memref<16x32xf32, #tpu.memory_space<vmem>>) attributes {dimension_semantics = [#tpu.dimension_semantics<parallel>, #tpu.dimension_semantics<arbitrary>], iteration_bounds = array<i64: 2, 2>, scalar_prefetch = 0 : i64, scratch_operands = 3 : i64, tpu.core_type = #tpu.core_type<tc>, window_params = [{transform_indices = @transform_0, window_bounds = array<i64: 1, 16, 32>}, {pipeline_mode = #tpu.pipeline_mode<synchronous>, transform_indices = @transform_1, window_bounds = array<i64: 16, 16>}, {transform_indices = @transform_2, window_bounds = array<i64: 1, 1, 32>}, {transform_indices = @transform_3, window_bounds = array<i64: 1, 1, 32>}, {transform_indices = @transform_4, window_bounds = array<i64: 1, 32, 96>}, {transform_indices = @transform_5, window_bounds = array<i64: 1, 1, 96>}, {transform_indices = @transform_6, window_bounds = array<i64: 1, 32, 32>}, {transform_indices = @transform_7, window_bounds = array<i64: 1, 1, 32>}, {transform_indices = @transform_8, window_bounds = array<i64: 1, 1, 32>}, {transform_indices = @transform_9, window_bounds = array<i64: 1, 1, 32>}, {transform_indices = @transform_10, window_bounds = array<i64: 1, 32, 32>}, {transform_indices = @transform_11, window_bounds = array<i64: 1, 1, 32>}, {transform_indices = @transform_12, window_bounds = array<i64: 1, 32, 32>}, {transform_indices = @transform_13, window_bounds = array<i64: 1, 1, 32>}, {pipeline_mode = #tpu.pipeline_mode<synchronous>, transform_indices = @transform_14, window_bounds = array<i64: 1, 32>}, {pipeline_mode = #tpu.pipeline_mode<synchronous>, transform_indices = @transform_15, window_bounds = array<i64: 1, 32>}, {pipeline_mode = #tpu.pipeline_mode<synchronous>, transform_indices = @transform_16, window_bounds = array<i64: 32, 128>}, {pipeline_mode = #tpu.pipeline_mode<synchronous>, transform_indices = @transform_17, window_bounds = array<i64: 1, 128>}, {pipeline_mode = #tpu.pipeline_mode<synchronous>, transform_indices = @transform_18, window_bounds = array<i64: 128, 32>}, {pipeline_mode = #tpu.pipeline_mode<synchronous>, transform_indices = @transform_19, window_bounds = array<i64: 1, 32>}, {transform_indices = @transform_20, window_bounds = array<i64: 1, 16, 32>}]} {
    %c0_i32 = arith.constant 0 : i32
    %0 = arith.cmpi eq, %arg1, %c0_i32 : i32
    %1 = arith.extui %0 : i1 to i32
    %c0_i32_0 = arith.constant 0 : i32
    %2 = arith.cmpi ne, %1, %c0_i32_0 : i32
    scf.if %2 {
      %c0_89 = arith.constant 0 : index
      %c0_90 = arith.constant 0 : index
      %c0_91 = arith.constant 0 : index
      %164 = vector.load %arg2[%c0_89, %c0_90, %c0_91] : memref<1x16x32xf32, #tpu.memory_space<vmem>>, vector<1x16x32xf32>
      %165 = vector.shape_cast %164 : vector<1x16x32xf32> to vector<16x32xf32>
      %c0_92 = arith.constant 0 : index
      %c0_93 = arith.constant 0 : index
      %166 = vector.load %arg23[%c0_92, %c0_93] : memref<16x32xf32, #tpu.memory_space<vmem>>, vector<16x32xf32>
      tpu.vector_store %arg23[%c0_92, %c0_93], %165 {strides = array<i32>} : memref<16x32xf32, #tpu.memory_space<vmem>>, vector<16x32xf32>,
    } else {
    }
    %c0 = arith.constant 0 : index
    %c0_1 = arith.constant 0 : index
    %3 = vector.load %arg23[%c0, %c0_1] : memref<16x32xf32, #tpu.memory_space<vmem>>, vector<16x32xf32>
    %c0_2 = arith.constant 0 : index
    %c0_3 = arith.constant 0 : index
    %4 = vector.load %arg3[%c0_2, %c0_3] : memref<16x16xf32, #tpu.memory_space<vmem>>, vector<16x16xf32>
    %c0_4 = arith.constant 0 : index
    %c0_5 = arith.constant 0 : index
    %c0_6 = arith.constant 0 : index
    %5 = vector.load %arg4[%c0_4, %c0_5, %c0_6] : memref<1x1x32xf32, #tpu.memory_space<vmem>>, vector<1x1x32xf32>
    %6 = vector.shape_cast %5 : vector<1x1x32xf32> to vector<1x32xf32>
    %c0_7 = arith.constant 0 : index
    %c0_8 = arith.constant 0 : index
    %c0_9 = arith.constant 0 : index
    %7 = vector.load %arg5[%c0_7, %c0_8, %c0_9] : memref<1x1x32xf32, #tpu.memory_space<vmem>>, vector<1x1x32xf32>
    %8 = vector.shape_cast %7 : vector<1x1x32xf32> to vector<1x32xf32>
    %cst = arith.constant dense<0.000000e+00> : vector<16xf32>
    %9 = vector.multi_reduction <add>, %3, %cst [1] : vector<16x32xf32> to vector<16xf32>
    %10 = vector.shape_cast %9 : vector<16xf32> to vector<16x1xf32>
    %cst_10 = arith.constant 3.200000e+01 : f32
    %11 = vector.broadcast %cst_10 : f32 to vector<16x1xf32>
    %12 = arith.divf %10, %11 : vector<16x1xf32>
    %13 = vector.broadcast %12 : vector<16x1xf32> to vector<16x32xf32>
    %14 = arith.subf %3, %13 : vector<16x32xf32>
    %15 = arith.mulf %14, %14 : vector<16x32xf32>
    %cst_11 = arith.constant dense<0.000000e+00> : vector<16xf32>
    %16 = vector.multi_reduction <add>, %15, %cst_11 [1] : vector<16x32xf32> to vector<16xf32>
    %17 = vector.shape_cast %16 : vector<16xf32> to vector<16x1xf32>
    %cst_12 = arith.constant 3.200000e+01 : f32
    %18 = vector.broadcast %cst_12 : f32 to vector<16x1xf32>
    %19 = arith.divf %17, %18 : vector<16x1xf32>
    %cst_13 = arith.constant 9.99999974E-6 : f32
    %20 = vector.broadcast %cst_13 : f32 to vector<16x1xf32>
    %21 = arith.addf %19, %20 : vector<16x1xf32>
    %22 = math.rsqrt %21 : vector<16x1xf32>
    %23 = vector.broadcast %22 : vector<16x1xf32> to vector<16x32xf32>
    %24 = arith.mulf %14, %23 : vector<16x32xf32>
    %25 = vector.broadcast %6 : vector<1x32xf32> to vector<16x32xf32>
    %26 = arith.mulf %24, %25 : vector<16x32xf32>
    %27 = vector.broadcast %8 : vector<1x32xf32> to vector<16x32xf32>
    %28 = arith.addf %26, %27 : vector<16x32xf32>
    %29 = arith.truncf %28 : vector<16x32xf32> to vector<16x32xbf16>
    %c0_14 = arith.constant 0 : index
    %c0_15 = arith.constant 0 : index
    %c0_16 = arith.constant 0 : index
    %30 = vector.load %arg6[%c0_14, %c0_15, %c0_16] : memref<1x32x96xbf16, #tpu.memory_space<vmem>>, vector<1x32x96xbf16>
    %31 = vector.shape_cast %30 : vector<1x32x96xbf16> to vector<32x96xbf16>
    %cst_17 = arith.constant dense<0.000000e+00> : vector<16x96xf32>
    %32 = tpu.matmul %29, %31, %cst_17 {dimension_numbers = #tpu.dot_dimension_numbers<[1], [0], [0], [1], [0, 0, 1, 1], [], []>} : vector<16x32xbf16>, vector<32x96xbf16>, vector<16x96xf32> -> vector<16x96xf32>
    %c0_18 = arith.constant 0 : index
    %c0_19 = arith.constant 0 : index
    %c0_20 = arith.constant 0 : index
    %33 = vector.load %arg7[%c0_18, %c0_19, %c0_20] : memref<1x1x96xf32, #tpu.memory_space<vmem>>, vector<1x1x96xf32>
    %34 = vector.shape_cast %33 : vector<1x1x96xf32> to vector<1x96xf32>
    %35 = vector.broadcast %34 : vector<1x96xf32> to vector<16x96xf32>
    %36 = arith.addf %32, %35 : vector<16x96xf32>
    %c0_21 = arith.constant 0 : index
    %c0_22 = arith.constant 0 : index
    %37 = vector.load %arg24[%c0_21, %c0_22] : memref<16x96xf32, #tpu.memory_space<vmem>>, vector<16x96xf32>
    tpu.vector_store %arg24[%c0_21, %c0_22], %36 {strides = array<i32>} : memref<16x96xf32, #tpu.memory_space<vmem>>, vector<16x96xf32>,
    %c0_23 = arith.constant 0 : index
    %c0_24 = arith.constant 0 : index
    %38 = vector.load %arg24[%c0_23, %c0_24] : memref<16x96xf32, #tpu.memory_space<vmem>>, vector<16x8xf32>
    %c0_25 = arith.constant 0 : index
    %c8 = arith.constant 8 : index
    %39 = vector.load %arg24[%c0_25, %c8] : memref<16x96xf32, #tpu.memory_space<vmem>>, vector<16x8xf32>
    %c0_26 = arith.constant 0 : index
    %c16 = arith.constant 16 : index
    %40 = vector.load %arg24[%c0_26, %c16] : memref<16x96xf32, #tpu.memory_space<vmem>>, vector<16x8xf32>
    %c0_27 = arith.constant 0 : index
    %c24 = arith.constant 24 : index
    %41 = vector.load %arg24[%c0_27, %c24] : memref<16x96xf32, #tpu.memory_space<vmem>>, vector<16x8xf32>
    %42 = vector.shape_cast %38 : vector<16x8xf32> to vector<1x16x8xf32>
    %43 = vector.shape_cast %39 : vector<16x8xf32> to vector<1x16x8xf32>
    %44 = vector.shape_cast %40 : vector<16x8xf32> to vector<1x16x8xf32>
    %45 = vector.shape_cast %41 : vector<16x8xf32> to vector<1x16x8xf32>
    %46 = tpu.concatenate %42, %43, %44, %45 in 0 : vector<1x16x8xf32>, vector<1x16x8xf32>, vector<1x16x8xf32>, vector<1x16x8xf32> -> vector<4x16x8xf32>
    %c0_28 = arith.constant 0 : index
    %c32 = arith.constant 32 : index
    %47 = vector.load %arg24[%c0_28, %c32] : memref<16x96xf32, #tpu.memory_space<vmem>>, vector<16x8xf32>
    %c0_29 = arith.constant 0 : index
    %c40 = arith.constant 40 : index
    %48 = vector.load %arg24[%c0_29, %c40] : memref<16x96xf32, #tpu.memory_space<vmem>>, vector<16x8xf32>
    %c0_30 = arith.constant 0 : index
    %c48 = arith.constant 48 : index
    %49 = vector.load %arg24[%c0_30, %c48] : memref<16x96xf32, #tpu.memory_space<vmem>>, vector<16x8xf32>
    %c0_31 = arith.constant 0 : index
    %c56 = arith.constant 56 : index
    %50 = vector.load %arg24[%c0_31, %c56] : memref<16x96xf32, #tpu.memory_space<vmem>>, vector<16x8xf32>
    %51 = vector.shape_cast %47 : vector<16x8xf32> to vector<1x16x8xf32>
    %52 = vector.shape_cast %48 : vector<16x8xf32> to vector<1x16x8xf32>
    %53 = vector.shape_cast %49 : vector<16x8xf32> to vector<1x16x8xf32>
    %54 = vector.shape_cast %50 : vector<16x8xf32> to vector<1x16x8xf32>
    %55 = tpu.concatenate %51, %52, %53, %54 in 0 : vector<1x16x8xf32>, vector<1x16x8xf32>, vector<1x16x8xf32>, vector<1x16x8xf32> -> vector<4x16x8xf32>
    %c0_32 = arith.constant 0 : index
    %c64 = arith.constant 64 : index
    %56 = vector.load %arg24[%c0_32, %c64] : memref<16x96xf32, #tpu.memory_space<vmem>>, vector<16x8xf32>
    %c0_33 = arith.constant 0 : index
    %c72 = arith.constant 72 : index
    %57 = vector.load %arg24[%c0_33, %c72] : memref<16x96xf32, #tpu.memory_space<vmem>>, vector<16x8xf32>
    %c0_34 = arith.constant 0 : index
    %c80 = arith.constant 80 : index
    %58 = vector.load %arg24[%c0_34, %c80] : memref<16x96xf32, #tpu.memory_space<vmem>>, vector<16x8xf32>
    %c0_35 = arith.constant 0 : index
    %c88 = arith.constant 88 : index
    %59 = vector.load %arg24[%c0_35, %c88] : memref<16x96xf32, #tpu.memory_space<vmem>>, vector<16x8xf32>
    %60 = vector.shape_cast %56 : vector<16x8xf32> to vector<1x16x8xf32>
    %61 = vector.shape_cast %57 : vector<16x8xf32> to vector<1x16x8xf32>
    %62 = vector.shape_cast %58 : vector<16x8xf32> to vector<1x16x8xf32>
    %63 = vector.shape_cast %59 : vector<16x8xf32> to vector<1x16x8xf32>
    %64 = tpu.concatenate %60, %61, %62, %63 in 0 : vector<1x16x8xf32>, vector<1x16x8xf32>, vector<1x16x8xf32>, vector<1x16x8xf32> -> vector<4x16x8xf32>
    %65 = arith.truncf %46 : vector<4x16x8xf32> to vector<4x16x8xbf16>
    %66 = arith.truncf %55 : vector<4x16x8xf32> to vector<4x16x8xbf16>
    "tpu.trace_start"() <{level = 10 : i32, message = "hqe,hke->hqk"}> : () -> ()
    %cst_36 = arith.constant dense<0.000000e+00> : vector<4x16x16xf32>
    %67 = tpu.matmul %65, %66, %cst_36 {dimension_numbers = #tpu.dot_dimension_numbers<[2], [2], [1], [1], [0, 0, 0, 1, 1, 1], [0], [0]>} : vector<4x16x8xbf16>, vector<4x16x8xbf16>, vector<4x16x16xf32> -> vector<4x16x16xf32>
    "tpu.trace_stop"() : () -> ()
    %68 = vector.shape_cast %4 : vector<16x16xf32> to vector<1x16x16xf32>
    %69 = vector.broadcast %68 : vector<1x16x16xf32> to vector<4x16x16xf32>
    %70 = arith.addf %67, %69 : vector<4x16x16xf32>
    %cst_37 = arith.constant dense<0xFF800000> : vector<4x16xf32>
    %71 = vector.multi_reduction <maximumf>, %70, %cst_37 [2] : vector<4x16x16xf32> to vector<4x16xf32>
    %72 = vector.shape_cast %71 : vector<4x16xf32> to vector<4x16x1xf32>
    %73 = vector.broadcast %72 : vector<4x16x1xf32> to vector<4x16x16xf32>
    %74 = arith.subf %70, %73 : vector<4x16x16xf32>
    %75 = math.exp %74 : vector<4x16x16xf32>
    %cst_38 = arith.constant dense<0.000000e+00> : vector<4x16xf32>
    %76 = vector.multi_reduction <add>, %75, %cst_38 [2] : vector<4x16x16xf32> to vector<4x16xf32>
    %77 = vector.shape_cast %76 : vector<4x16xf32> to vector<4x16x1xf32>
    %78 = tpu.reciprocal %77 {approx = true} : vector<4x16x1xf32> -> vector<4x16x1xf32>
    %79 = vector.broadcast %78 : vector<4x16x1xf32> to vector<4x16x16xf32>
    %80 = arith.mulf %75, %79 : vector<4x16x16xf32>
    %81 = arith.truncf %80 : vector<4x16x16xf32> to vector<4x16x16xbf16>
    %82 = arith.truncf %64 : vector<4x16x8xf32> to vector<4x16x8xbf16>
    "tpu.trace_start"() <{level = 10 : i32, message = "hqk,hke->hqe"}> : () -> ()
    %cst_39 = arith.constant dense<0.000000e+00> : vector<4x16x8xf32>
    %83 = tpu.matmul %81, %82, %cst_39 {dimension_numbers = #tpu.dot_dimension_numbers<[2], [1], [1], [2], [0, 0, 0, 1, 1, 2], [0], [0]>} : vector<4x16x16xbf16>, vector<4x16x8xbf16>, vector<4x16x8xf32> -> vector<4x16x8xf32>
    "tpu.trace_stop"() : () -> ()
    %84 = vector.extract_strided_slice %83 {offsets = [0, 0, 0], sizes = [1, 16, 8], strides = [1, 1, 1]} : vector<4x16x8xf32> to vector<1x16x8xf32>
    %85 = vector.shape_cast %84 : vector<1x16x8xf32> to vector<16x8xf32>
    %c0_40 = arith.constant 0 : index
    %c0_41 = arith.constant 0 : index
    %86 = vector.load %arg25[%c0_40, %c0_41] : memref<16x32xf32, #tpu.memory_space<vmem>>, vector<16x8xf32>
    tpu.vector_store %arg25[%c0_40, %c0_41], %85 {strides = array<i32>} : memref<16x32xf32, #tpu.memory_space<vmem>>, vector<16x8xf32>,
    %87 = vector.extract_strided_slice %83 {offsets = [1, 0, 0], sizes = [1, 16, 8], strides = [1, 1, 1]} : vector<4x16x8xf32> to vector<1x16x8xf32>
    %88 = vector.shape_cast %87 : vector<1x16x8xf32> to vector<16x8xf32>
    %c0_42 = arith.constant 0 : index
    %c8_43 = arith.constant 8 : index
    %89 = vector.load %arg25[%c0_42, %c8_43] : memref<16x32xf32, #tpu.memory_space<vmem>>, vector<16x8xf32>
    tpu.vector_store %arg25[%c0_42, %c8_43], %88 {strides = array<i32>} : memref<16x32xf32, #tpu.memory_space<vmem>>, vector<16x8xf32>,
    %90 = vector.extract_strided_slice %83 {offsets = [2, 0, 0], sizes = [1, 16, 8], strides = [1, 1, 1]} : vector<4x16x8xf32> to vector<1x16x8xf32>
    %91 = vector.shape_cast %90 : vector<1x16x8xf32> to vector<16x8xf32>
    %c0_44 = arith.constant 0 : index
    %c16_45 = arith.constant 16 : index
    %92 = vector.load %arg25[%c0_44, %c16_45] : memref<16x32xf32, #tpu.memory_space<vmem>>, vector<16x8xf32>
    tpu.vector_store %arg25[%c0_44, %c16_45], %91 {strides = array<i32>} : memref<16x32xf32, #tpu.memory_space<vmem>>, vector<16x8xf32>,
    %93 = vector.extract_strided_slice %83 {offsets = [3, 0, 0], sizes = [1, 16, 8], strides = [1, 1, 1]} : vector<4x16x8xf32> to vector<1x16x8xf32>
    %94 = vector.shape_cast %93 : vector<1x16x8xf32> to vector<16x8xf32>
    %c0_46 = arith.constant 0 : index
    %c24_47 = arith.constant 24 : index
    %95 = vector.load %arg25[%c0_46, %c24_47] : memref<16x32xf32, #tpu.memory_space<vmem>>, vector<16x8xf32>
    tpu.vector_store %arg25[%c0_46, %c24_47], %94 {strides = array<i32>} : memref<16x32xf32, #tpu.memory_space<vmem>>, vector<16x8xf32>,
    %c0_48 = arith.constant 0 : index
    %c0_49 = arith.constant 0 : index
    %96 = vector.load %arg25[%c0_48, %c0_49] : memref<16x32xf32, #tpu.memory_space<vmem>>, vector<16x32xf32>
    %97 = arith.truncf %96 : vector<16x32xf32> to vector<16x32xbf16>
    %c0_50 = arith.constant 0 : index
    %c0_51 = arith.constant 0 : index
    %c0_52 = arith.constant 0 : index
    %98 = vector.load %arg8[%c0_50, %c0_51, %c0_52] : memref<1x32x32xbf16, #tpu.memory_space<vmem>>, vector<1x32x32xbf16>
    %99 = vector.shape_cast %98 : vector<1x32x32xbf16> to vector<32x32xbf16>
    %cst_53 = arith.constant dense<0.000000e+00> : vector<16x32xf32>
    %100 = tpu.matmul %97, %99, %cst_53 {dimension_numbers = #tpu.dot_dimension_numbers<[1], [0], [0], [1], [0, 0, 1, 1], [], []>} : vector<16x32xbf16>, vector<32x32xbf16>, vector<16x32xf32> -> vector<16x32xf32>
    %c0_54 = arith.constant 0 : index
    %c0_55 = arith.constant 0 : index
    %c0_56 = arith.constant 0 : index
    %101 = vector.load %arg9[%c0_54, %c0_55, %c0_56] : memref<1x1x32xf32, #tpu.memory_space<vmem>>, vector<1x1x32xf32>
    %102 = vector.shape_cast %101 : vector<1x1x32xf32> to vector<1x32xf32>
    %103 = vector.broadcast %102 : vector<1x32xf32> to vector<16x32xf32>
    %104 = arith.addf %100, %103 : vector<16x32xf32>
    %105 = arith.addf %3, %104 : vector<16x32xf32>
    %c0_57 = arith.constant 0 : index
    %c0_58 = arith.constant 0 : index
    %c0_59 = arith.constant 0 : index
    %106 = vector.load %arg10[%c0_57, %c0_58, %c0_59] : memref<1x1x32xf32, #tpu.memory_space<vmem>>, vector<1x1x32xf32>
    %107 = vector.shape_cast %106 : vector<1x1x32xf32> to vector<1x32xf32>
    %c0_60 = arith.constant 0 : index
    %c0_61 = arith.constant 0 : index
    %c0_62 = arith.constant 0 : index
    %108 = vector.load %arg11[%c0_60, %c0_61, %c0_62] : memref<1x1x32xf32, #tpu.memory_space<vmem>>, vector<1x1x32xf32>
    %109 = vector.shape_cast %108 : vector<1x1x32xf32> to vector<1x32xf32>
    %cst_63 = arith.constant dense<0.000000e+00> : vector<16xf32>
    %110 = vector.multi_reduction <add>, %105, %cst_63 [1] : vector<16x32xf32> to vector<16xf32>
    %111 = vector.shape_cast %110 : vector<16xf32> to vector<16x1xf32>
    %cst_64 = arith.constant 3.200000e+01 : f32
    %112 = vector.broadcast %cst_64 : f32 to vector<16x1xf32>
    %113 = arith.divf %111, %112 : vector<16x1xf32>
    %114 = vector.broadcast %113 : vector<16x1xf32> to vector<16x32xf32>
    %115 = arith.subf %105, %114 : vector<16x32xf32>
    %116 = arith.mulf %115, %115 : vector<16x32xf32>
    %cst_65 = arith.constant dense<0.000000e+00> : vector<16xf32>
    %117 = vector.multi_reduction <add>, %116, %cst_65 [1] : vector<16x32xf32> to vector<16xf32>
    %118 = vector.shape_cast %117 : vector<16xf32> to vector<16x1xf32>
    %cst_66 = arith.constant 3.200000e+01 : f32
    %119 = vector.broadcast %cst_66 : f32 to vector<16x1xf32>
    %120 = arith.divf %118, %119 : vector<16x1xf32>
    %cst_67 = arith.constant 9.99999974E-6 : f32
    %121 = vector.broadcast %cst_67 : f32 to vector<16x1xf32>
    %122 = arith.addf %120, %121 : vector<16x1xf32>
    %123 = math.rsqrt %122 : vector<16x1xf32>
    %124 = vector.broadcast %123 : vector<16x1xf32> to vector<16x32xf32>
    %125 = arith.mulf %115, %124 : vector<16x32xf32>
    %126 = vector.broadcast %107 : vector<1x32xf32> to vector<16x32xf32>
    %127 = arith.mulf %125, %126 : vector<16x32xf32>
    %128 = vector.broadcast %109 : vector<1x32xf32> to vector<16x32xf32>
    %129 = arith.addf %127, %128 : vector<16x32xf32>
    %130 = arith.truncf %129 : vector<16x32xf32> to vector<16x32xbf16>
    %c0_68 = arith.constant 0 : index
    %c0_69 = arith.constant 0 : index
    %c0_70 = arith.constant 0 : index
    %131 = vector.load %arg12[%c0_68, %c0_69, %c0_70] : memref<1x32x32xbf16, #tpu.memory_space<vmem>>, vector<1x32x32xbf16>
    %132 = vector.shape_cast %131 : vector<1x32x32xbf16> to vector<32x32xbf16>
    %cst_71 = arith.constant dense<0.000000e+00> : vector<16x32xf32>
    %133 = tpu.matmul %130, %132, %cst_71 {dimension_numbers = #tpu.dot_dimension_numbers<[1], [0], [0], [1], [0, 0, 1, 1], [], []>} : vector<16x32xbf16>, vector<32x32xbf16>, vector<16x32xf32> -> vector<16x32xf32>
    %c0_72 = arith.constant 0 : index
    %c0_73 = arith.constant 0 : index
    %c0_74 = arith.constant 0 : index
    %134 = vector.load %arg13[%c0_72, %c0_73, %c0_74] : memref<1x1x32xf32, #tpu.memory_space<vmem>>, vector<1x1x32xf32>
    %135 = vector.shape_cast %134 : vector<1x1x32xf32> to vector<1x32xf32>
    %136 = vector.broadcast %135 : vector<1x32xf32> to vector<16x32xf32>
    %137 = arith.addf %133, %136 : vector<16x32xf32>
    %cst_75 = arith.constant 5.000000e-01 : f32
    %138 = vector.broadcast %cst_75 : f32 to vector<16x32xf32>
    %139 = arith.mulf %138, %137 : vector<16x32xf32>
    %cst_76 = arith.constant 4.471500e-02 : f32
    %140 = vector.broadcast %cst_76 : f32 to vector<16x32xf32>
    %141 = arith.mulf %140, %137 : vector<16x32xf32>
    %142 = arith.mulf %141, %137 : vector<16x32xf32>
    %143 = arith.mulf %142, %137 : vector<16x32xf32>
    %144 = arith.addf %137, %143 : vector<16x32xf32>
    %cst_77 = arith.constant 0.797884583 : f32
    %145 = vector.broadcast %cst_77 : f32 to vector<16x32xf32>
    %146 = arith.mulf %145, %144 : vector<16x32xf32>
    %147 = math.tanh %146 : vector<16x32xf32>
    %cst_78 = arith.constant 1.000000e+00 : f32
    %148 = vector.broadcast %cst_78 : f32 to vector<16x32xf32>
    %149 = arith.addf %148, %147 : vector<16x32xf32>
    %150 = arith.mulf %139, %149 : vector<16x32xf32>
    %151 = arith.truncf %150 : vector<16x32xf32> to vector<16x32xbf16>
    %c0_79 = arith.constant 0 : index
    %c0_80 = arith.constant 0 : index
    %c0_81 = arith.constant 0 : index
    %152 = vector.load %arg14[%c0_79, %c0_80, %c0_81] : memref<1x32x32xbf16, #tpu.memory_space<vmem>>, vector<1x32x32xbf16>
    %153 = vector.shape_cast %152 : vector<1x32x32xbf16> to vector<32x32xbf16>
    %cst_82 = arith.constant dense<0.000000e+00> : vector<16x32xf32>
    %154 = tpu.matmul %151, %153, %cst_82 {dimension_numbers = #tpu.dot_dimension_numbers<[1], [0], [0], [1], [0, 0, 1, 1], [], []>} : vector<16x32xbf16>, vector<32x32xbf16>, vector<16x32xf32> -> vector<16x32xf32>
    %c0_83 = arith.constant 0 : index
    %c0_84 = arith.constant 0 : index
    %c0_85 = arith.constant 0 : index
    %155 = vector.load %arg15[%c0_83, %c0_84, %c0_85] : memref<1x1x32xf32, #tpu.memory_space<vmem>>, vector<1x1x32xf32>
    %156 = vector.shape_cast %155 : vector<1x1x32xf32> to vector<1x32xf32>
    %157 = vector.broadcast %156 : vector<1x32xf32> to vector<16x32xf32>
    %158 = arith.addf %154, %157 : vector<16x32xf32>
    %159 = arith.addf %105, %158 : vector<16x32xf32>
    %c0_86 = arith.constant 0 : index
    %c0_87 = arith.constant 0 : index
    %160 = vector.load %arg23[%c0_86, %c0_87] : memref<16x32xf32, #tpu.memory_space<vmem>>, vector<16x32xf32>
    tpu.vector_store %arg23[%c0_86, %c0_87], %159 {strides = array<i32>} : memref<16x32xf32, #tpu.memory_space<vmem>>, vector<16x32xf32>,
    %c1_i32 = arith.constant 1 : i32
    %161 = arith.cmpi eq, %arg1, %c1_i32 : i32
    %162 = arith.extui %161 : i1 to i32
    %c0_i32_88 = arith.constant 0 : i32
    %163 = arith.cmpi ne, %162, %c0_i32_88 : i32
    scf.if %163 {
      %c0_89 = arith.constant 0 : index
      %c0_90 = arith.constant 0 : index
      %c0_91 = arith.constant 0 : index
      %164 = vector.load %arg2[%c0_89, %c0_90, %c0_91] : memref<1x16x32xf32, #tpu.memory_space<vmem>>, vector<1x16x32xf32>
      %165 = vector.shape_cast %164 : vector<1x16x32xf32> to vector<16x32xf32>
      %166 = arith.addf %165, %159 : vector<16x32xf32>
      %c0_92 = arith.constant 0 : index
      %c0_93 = arith.constant 0 : index
      %167 = vector.load %arg16[%c0_92, %c0_93] : memref<1x32xf32, #tpu.memory_space<vmem>>, vector<1x32xf32>
      %c0_94 = arith.constant 0 : index
      %c0_95 = arith.constant 0 : index
      %168 = vector.load %arg17[%c0_94, %c0_95] : memref<1x32xf32, #tpu.memory_space<vmem>>, vector<1x32xf32>
      %cst_96 = arith.constant dense<0.000000e+00> : vector<16xf32>
      %169 = vector.multi_reduction <add>, %166, %cst_96 [1] : vector<16x32xf32> to vector<16xf32>
      %170 = vector.shape_cast %169 : vector<16xf32> to vector<16x1xf32>
      %cst_97 = arith.constant 3.200000e+01 : f32
      %171 = vector.broadcast %cst_97 : f32 to vector<16x1xf32>
      %172 = arith.divf %170, %171 : vector<16x1xf32>
      %173 = vector.broadcast %172 : vector<16x1xf32> to vector<16x32xf32>
      %174 = arith.subf %166, %173 : vector<16x32xf32>
      %175 = arith.mulf %174, %174 : vector<16x32xf32>
      %cst_98 = arith.constant dense<0.000000e+00> : vector<16xf32>
      %176 = vector.multi_reduction <add>, %175, %cst_98 [1] : vector<16x32xf32> to vector<16xf32>
      %177 = vector.shape_cast %176 : vector<16xf32> to vector<16x1xf32>
      %cst_99 = arith.constant 3.200000e+01 : f32
      %178 = vector.broadcast %cst_99 : f32 to vector<16x1xf32>
      %179 = arith.divf %177, %178 : vector<16x1xf32>
      %cst_100 = arith.constant 9.99999974E-6 : f32
      %180 = vector.broadcast %cst_100 : f32 to vector<16x1xf32>
      %181 = arith.addf %179, %180 : vector<16x1xf32>
      %182 = math.rsqrt %181 : vector<16x1xf32>
      %183 = vector.broadcast %182 : vector<16x1xf32> to vector<16x32xf32>
      %184 = arith.mulf %174, %183 : vector<16x32xf32>
      %185 = vector.broadcast %167 : vector<1x32xf32> to vector<16x32xf32>
      %186 = arith.mulf %184, %185 : vector<16x32xf32>
      %187 = vector.broadcast %168 : vector<1x32xf32> to vector<16x32xf32>
      %188 = arith.addf %186, %187 : vector<16x32xf32>
      %189 = arith.truncf %188 : vector<16x32xf32> to vector<16x32xbf16>
      %c0_101 = arith.constant 0 : index
      %c0_102 = arith.constant 0 : index
      %190 = vector.load %arg18[%c0_101, %c0_102] : memref<32x128xbf16, #tpu.memory_space<vmem>>, vector<32x128xbf16>
      %cst_103 = arith.constant dense<0.000000e+00> : vector<16x128xf32>
      %191 = tpu.matmul %189, %190, %cst_103 {dimension_numbers = #tpu.dot_dimension_numbers<[1], [0], [0], [1], [0, 0, 1, 1], [], []>} : vector<16x32xbf16>, vector<32x128xbf16>, vector<16x128xf32> -> vector<16x128xf32>
      %c0_104 = arith.constant 0 : index
      %c0_105 = arith.constant 0 : index
      %192 = vector.load %arg19[%c0_104, %c0_105] : memref<1x128xf32, #tpu.memory_space<vmem>>, vector<1x128xf32>
      %193 = vector.broadcast %192 : vector<1x128xf32> to vector<16x128xf32>
      %194 = arith.addf %191, %193 : vector<16x128xf32>
      %cst_106 = arith.constant 5.000000e-01 : f32
      %195 = vector.broadcast %cst_106 : f32 to vector<16x128xf32>
      %196 = arith.mulf %195, %194 : vector<16x128xf32>
      %cst_107 = arith.constant 4.471500e-02 : f32
      %197 = vector.broadcast %cst_107 : f32 to vector<16x128xf32>
      %198 = arith.mulf %197, %194 : vector<16x128xf32>
      %199 = arith.mulf %198, %194 : vector<16x128xf32>
      %200 = arith.mulf %199, %194 : vector<16x128xf32>
      %201 = arith.addf %194, %200 : vector<16x128xf32>
      %cst_108 = arith.constant 0.797884583 : f32
      %202 = vector.broadcast %cst_108 : f32 to vector<16x128xf32>
      %203 = arith.mulf %202, %201 : vector<16x128xf32>
      %204 = math.tanh %203 : vector<16x128xf32>
      %cst_109 = arith.constant 1.000000e+00 : f32
      %205 = vector.broadcast %cst_109 : f32 to vector<16x128xf32>
      %206 = arith.addf %205, %204 : vector<16x128xf32>
      %207 = arith.mulf %196, %206 : vector<16x128xf32>
      %208 = arith.truncf %207 : vector<16x128xf32> to vector<16x128xbf16>
      %c0_110 = arith.constant 0 : index
      %c0_111 = arith.constant 0 : index
      %209 = vector.load %arg20[%c0_110, %c0_111] : memref<128x32xbf16, #tpu.memory_space<vmem>>, vector<128x32xbf16>
      %cst_112 = arith.constant dense<0.000000e+00> : vector<16x32xf32>
      %210 = tpu.matmul %208, %209, %cst_112 {dimension_numbers = #tpu.dot_dimension_numbers<[1], [0], [0], [1], [0, 0, 1, 1], [], []>} : vector<16x128xbf16>, vector<128x32xbf16>, vector<16x32xf32> -> vector<16x32xf32>
      %c0_113 = arith.constant 0 : index
      %c0_114 = arith.constant 0 : index
      %211 = vector.load %arg21[%c0_113, %c0_114] : memref<1x32xf32, #tpu.memory_space<vmem>>, vector<1x32xf32>
      %212 = vector.broadcast %211 : vector<1x32xf32> to vector<16x32xf32>
      %213 = arith.addf %210, %212 : vector<16x32xf32>
      %214 = arith.addf %166, %213 : vector<16x32xf32>
      %c0_115 = arith.constant 0 : index
      %c0_116 = arith.constant 0 : index
      %c0_117 = arith.constant 0 : index
      %215 = vector.load %arg22[%c0_115, %c0_116, %c0_117] : memref<1x16x32xf32, #tpu.memory_space<vmem>>, vector<1x16x32xf32>
      %216 = vector.shape_cast %215 : vector<1x16x32xf32> to vector<16x32xf32>
      %217 = vector.shape_cast %214 : vector<16x32xf32> to vector<1x16x32xf32>
      tpu.vector_store %arg22[%c0_115, %c0_116, %c0_117], %217 {strides = array<i32>} : memref<1x16x32xf32, #tpu.memory_space<vmem>>, vector<1x16x32xf32>,
    } else {
    }
    return
  }
  func.func @transform_0(%arg0: i32, %arg1: i32) -> (i32, i32, i32) {
    %c0_i32 = arith.constant 0 : i32
    %c0_i32_0 = arith.constant 0 : i32
    %c0_i32_1 = arith.constant 0 : i32
    return %arg0, %c0_i32, %c0_i32_0 : i32, i32, i32
  }
  func.func @transform_1(%arg0: i32, %arg1: i32) -> (i32, i32) {
    %c0_i32 = arith.constant 0 : i32
    %c0_i32_0 = arith.constant 0 : i32
    %c0_i32_1 = arith.constant 0 : i32
    return %c0_i32, %c0_i32_0 : i32, i32
  }
  func.func @transform_2(%arg0: i32, %arg1: i32) -> (i32, i32, i32) {
    %c0_i32 = arith.constant 0 : i32
    %c0_i32_0 = arith.constant 0 : i32
    %c0_i32_1 = arith.constant 0 : i32
    return %arg1, %c0_i32, %c0_i32_0 : i32, i32, i32
  }
  func.func @transform_3(%arg0: i32, %arg1: i32) -> (i32, i32, i32) {
    %c0_i32 = arith.constant 0 : i32
    %c0_i32_0 = arith.constant 0 : i32
    %c0_i32_1 = arith.constant 0 : i32
    return %arg1, %c0_i32, %c0_i32_0 : i32, i32, i32
  }
  func.func @transform_4(%arg0: i32, %arg1: i32) -> (i32, i32, i32) {
    %c0_i32 = arith.constant 0 : i32
    %c0_i32_0 = arith.constant 0 : i32
    %c0_i32_1 = arith.constant 0 : i32
    return %arg1, %c0_i32, %c0_i32_0 : i32, i32, i32
  }
  func.func @transform_5(%arg0: i32, %arg1: i32) -> (i32, i32, i32) {
    %c0_i32 = arith.constant 0 : i32
    %c0_i32_0 = arith.constant 0 : i32
    %c0_i32_1 = arith.constant 0 : i32
    return %arg1, %c0_i32, %c0_i32_0 : i32, i32, i32
  }
  func.func @transform_6(%arg0: i32, %arg1: i32) -> (i32, i32, i32) {
    %c0_i32 = arith.constant 0 : i32
    %c0_i32_0 = arith.constant 0 : i32
    %c0_i32_1 = arith.constant 0 : i32
    return %arg1, %c0_i32, %c0_i32_0 : i32, i32, i32
  }
  func.func @transform_7(%arg0: i32, %arg1: i32) -> (i32, i32, i32) {
    %c0_i32 = arith.constant 0 : i32
    %c0_i32_0 = arith.constant 0 : i32
    %c0_i32_1 = arith.constant 0 : i32
    return %arg1, %c0_i32, %c0_i32_0 : i32, i32, i32
  }
  func.func @transform_8(%arg0: i32, %arg1: i32) -> (i32, i32, i32) {
    %c0_i32 = arith.constant 0 : i32
    %c0_i32_0 = arith.constant 0 : i32
    %c0_i32_1 = arith.constant 0 : i32
    return %arg1, %c0_i32, %c0_i32_0 : i32, i32, i32
  }
  func.func @transform_9(%arg0: i32, %arg1: i32) -> (i32, i32, i32) {
    %c0_i32 = arith.constant 0 : i32
    %c0_i32_0 = arith.constant 0 : i32
    %c0_i32_1 = arith.constant 0 : i32
    return %arg1, %c0_i32, %c0_i32_0 : i32, i32, i32
  }
  func.func @transform_10(%arg0: i32, %arg1: i32) -> (i32, i32, i32) {
    %c0_i32 = arith.constant 0 : i32
    %c0_i32_0 = arith.constant 0 : i32
    %c0_i32_1 = arith.constant 0 : i32
    return %arg1, %c0_i32, %c0_i32_0 : i32, i32, i32
  }
  func.func @transform_11(%arg0: i32, %arg1: i32) -> (i32, i32, i32) {
    %c0_i32 = arith.constant 0 : i32
    %c0_i32_0 = arith.constant 0 : i32
    %c0_i32_1 = arith.constant 0 : i32
    return %arg1, %c0_i32, %c0_i32_0 : i32, i32, i32
  }
  func.func @transform_12(%arg0: i32, %arg1: i32) -> (i32, i32, i32) {
    %c0_i32 = arith.constant 0 : i32
    %c0_i32_0 = arith.constant 0 : i32
    %c0_i32_1 = arith.constant 0 : i32
    return %arg1, %c0_i32, %c0_i32_0 : i32, i32, i32
  }
  func.func @transform_13(%arg0: i32, %arg1: i32) -> (i32, i32, i32) {
    %c0_i32 = arith.constant 0 : i32
    %c0_i32_0 = arith.constant 0 : i32
    %c0_i32_1 = arith.constant 0 : i32
    return %arg1, %c0_i32, %c0_i32_0 : i32, i32, i32
  }
  func.func @transform_14(%arg0: i32, %arg1: i32) -> (i32, i32) {
    %c0_i32 = arith.constant 0 : i32
    %c0_i32_0 = arith.constant 0 : i32
    %c0_i32_1 = arith.constant 0 : i32
    return %c0_i32, %c0_i32_0 : i32, i32
  }
  func.func @transform_15(%arg0: i32, %arg1: i32) -> (i32, i32) {
    %c0_i32 = arith.constant 0 : i32
    %c0_i32_0 = arith.constant 0 : i32
    %c0_i32_1 = arith.constant 0 : i32
    return %c0_i32, %c0_i32_0 : i32, i32
  }
  func.func @transform_16(%arg0: i32, %arg1: i32) -> (i32, i32) {
    %c0_i32 = arith.constant 0 : i32
    %c0_i32_0 = arith.constant 0 : i32
    %c0_i32_1 = arith.constant 0 : i32
    return %c0_i32, %c0_i32_0 : i32, i32
  }
  func.func @transform_17(%arg0: i32, %arg1: i32) -> (i32, i32) {
    %c0_i32 = arith.constant 0 : i32
    %c0_i32_0 = arith.constant 0 : i32
    %c0_i32_1 = arith.constant 0 : i32
    return %c0_i32, %c0_i32_0 : i32, i32
  }
  func.func @transform_18(%arg0: i32, %arg1: i32) -> (i32, i32) {
    %c0_i32 = arith.constant 0 : i32
    %c0_i32_0 = arith.constant 0 : i32
    %c0_i32_1 = arith.constant 0 : i32
    return %c0_i32, %c0_i32_0 : i32, i32
  }
  func.func @transform_19(%arg0: i32, %arg1: i32) -> (i32, i32) {
    %c0_i32 = arith.constant 0 : i32
    %c0_i32_0 = arith.constant 0 : i32
    %c0_i32_1 = arith.constant 0 : i32
    return %c0_i32, %c0_i32_0 : i32, i32
  }
  func.func @transform_20(%arg0: i32, %arg1: i32) -> (i32, i32, i32) {
    %c0_i32 = arith.constant 0 : i32
    %c0_i32_0 = arith.constant 0 : i32
    %c0_i32_1 = arith.constant 0 : i32
    return %arg0, %c0_i32, %c0_i32_0 : i32, i32, i32
  }
}

</mosaic_0001>

<bundles_post_ra>
// kernel: tpu_custom_call.1
= control target key start
LH: loop header
LB: loop body
LE: loop exit
PB: predicated region body
PF: predicated region fallthrough
CT: control target
= control target key end

     0   :  { %s4111_s0 = inlined_call_operand.vmem [shape: f32[2,16,32], index: 0, kind: input, shape index: {}]   ;;  %s4112_s1 = inlined_call_operand.vmem [shape: f32[16,16], index: 1, kind: input, shape index: {}]   ;;  %s4113_s2 = inlined_call_operand.hbm [shape: f32[2,1,32], index: 2, kind: input, shape index: {}]   ;;  %s4114_s3 = inlined_call_operand.hbm [shape: f32[2,1,32], index: 3, kind: input, shape index: {}]   ;;  %s4115_s4 = inlined_call_operand.vmem [shape: bf16[2,32,96], index: 4, kind: input, shape index: {}]   ;;  %s4116_s5 = inlined_call_operand.hbm [shape: f32[2,1,96], index: 5, kind: input, shape index: {}]   ;;  %s4117_s6 = inlined_call_operand.hbm [shape: bf16[2,32,32], index: 6, kind: input, shape index: {}]   ;;  %s4118_s7 = inlined_call_operand.hbm [shape: f32[2,1,32], index: 7, kind: input, shape index: {}]   ;;  %s4119_s8 = inlined_call_operand.hbm [shape: f32[2,1,32], index: 8, kind: input, shape index: {}]   ;;  %s4120_s9 = inlined_call_operand.hbm [shape: f32[2,1,32], index: 9, kind: input, shape index: {}]   ;;  %s4121_s10 = inlined_call_operand.hbm [shape: bf16[2,32,32], index: 10, kind: input, shape index: {}]   ;;  %s4122_s11 = inlined_call_operand.hbm [shape: f32[2,1,32], index: 11, kind: input, shape index: {}]   ;;  %s4123_s12 = inlined_call_operand.hbm [shape: bf16[2,32,32], index: 12, kind: input, shape index: {}]   ;;  %s4124_s13 = inlined_call_operand.hbm [shape: f32[2,1,32], index: 13, kind: input, shape index: {}]   ;;  %s4125_s14 = inlined_call_operand.vmem [shape: f32[1,32], index: 14, kind: input, shape index: {}]   ;;  %s4126_s15 = inlined_call_operand.hbm [shape: f32[1,32], index: 15, kind: input, shape index: {}]   ;;  %s4127_s16 = inlined_call_operand.hbm [shape: bf16[32,128], index: 16, kind: input, shape index: {}]   ;;  %s4128_s17 = inlined_call_operand.hbm [shape: f32[1,128], index: 17, kind: input, shape index: {}]   ;;  %s4129_s18 = inlined_call_operand.vmem [shape: bf16[128,32], index: 18, kind: input, shape index: {}]   ;;  %s4130_s19 = inlined_call_operand.hbm [shape: f32[1,32], index: 19, kind: input, shape index: {}]   ;;  %s4131_s20 = inlined_call_operand.hbm [shape: f32[2,16,32], index: 20, kind: output, shape index: {}]  }
   0x1   :  { %4158 = sst [smem:[#allocation55_spill]] %s4111_s0 }
   0x2   :  { %4159 = sst [smem:[#allocation56_spill]] %s4112_s1 }
   0x3   :  { %4160 = sst [smem:[#allocation57_spill]] %s4113_s2 }
   0x4   :  { %4161 = sst [smem:[#allocation58_spill]] %s4114_s3 }
   0x5   :  { %4162 = sst [smem:[#allocation59_spill]] %s4115_s4 }
   0x6   :  { %4163 = sst [smem:[#allocation60_spill]] %s4116_s5 }
   0x7   :  { %4164 = sst [smem:[#allocation61_spill]] %s4117_s6 }
   0x8   :  { %4165 = sst [smem:[#allocation62_spill]] %s4124_s13 }
   0x9   :  { %4166 = sst [smem:[#allocation63_spill]] %s4125_s14 }
   0xa   :  { %4167 = sst [smem:[#allocation64_spill]] %s4126_s15 }
   0xb   :  { %4168 = sst [smem:[#allocation65_spill]] %s4128_s17 }
   0xc   :  { %4169 = sst [smem:[#allocation66_spill]] %s4129_s18 }
   0xd   :  { %4170 = sst [smem:[#allocation67_spill]] %s4131_s20 }
   0xe   :  { %25 = vsyncpa [#allocation6], 0 }
   0xf   :  { %27 = vsyncpa [#allocation6 + $0x1], 0 }
  0x10   :  { %28 = vsyncpa [#allocation9], 0 }
  0x11   :  { %30 = vsyncpa [#allocation9 + $0x1], 0 }
  0x12   :  { %31 = vsyncpa [#allocation12], 0 }
  0x13   :  { %33 = vsyncpa [#allocation12 + $0x1], 0 }
  0x14   :  { %34 = vsyncpa [#allocation15], 0 }
  0x15   :  { %36 = vsyncpa [#allocation15 + $0x1], 0 }
  0x16   :  { %37 = vsyncpa [#allocation18], 0 }
  0x17   :  { %39 = vsyncpa [#allocation18 + $0x1], 0 }
  0x18   :  { %40 = vsyncpa [#allocation21], 0 }
  0x19   :  { %42 = vsyncpa [#allocation21 + $0x1], 0 }
  0x1a   :  { %43 = vsyncpa [#allocation24], 0 }
  0x1b   :  { %44 = vsyncpa [#allocation27], 0 }
  0x1c   :  { %45 = vsyncpa [#allocation7], 0 }
  0x1d   :  { %47 = vsyncpa [#allocation7 + $0x1], 0  ;;  %s3504_s1 = smov 0   ;;  %s3506_s22 = smov 0  }
  0x1e   :  { %s3508_s23 = smov 0   ;;  %s3510_s24 = smov 0  }
  0x1f   :  { %s3512_s2 = smov 0   ;;  %s3514_s25 = smov 0  }
  0x20   :  { %s3516_s3 = smov 0   ;;  %s3518_s26 = smov 0  }
  0x21   :  { %s3520_s27 = smov 0   ;;  %s3522_s28 = smov 0  }
  0x22   :  { %s3524_s4 = smov 0  }
  0x23 LB: > { %4171 = sst [smem:[#allocation39_spill]] %s3341_s1  ;;  %s3558_s29 = sadd.s32 4294967295, %s3381_s4   ;;  %s3381_s4 = sphi %s3524_s4, %s53_s4   ;;  %s3377_s28 = sphi %s3522_s28, %s4243_s28   ;;  %s3373_s27 = sphi %s3520_s27, %s4247_s27   ;;  %s3369_s26 = sphi %s3518_s26, %s4241_s26   ;;  %s3365_s3 = sphi %s3516_s3, %s4246_s3   ;;  %s3361_s25 = sphi %s3514_s25, %s4240_s25   ;;  %s3357_s2 = sphi %s3512_s2, %s4245_s2   ;;  %s3353_s24 = sphi %s3510_s24, %s4244_s24   ;;  %s3349_s23 = sphi %s3508_s23, %s4238_s23   ;;  %s3345_s22 = sphi %s3506_s22, %s4237_s22   ;;  %s3341_s1 = sphi %s3504_s1, %s4236_s1  }
  0x24   : > { %4172 = sst [smem:[#allocation40_spill]] %s3345_s22  ;;  %s2350_s30 = sadd.s32 4294967294, %s3381_s4  }
  0x25   : > { %4173 = sst [smem:[#allocation41_spill]] %s3349_s23  ;;  %s62_s0 = sadd.s32 1, %s3373_s27 }
  0x26   : > { %4174 = sst [smem:[#allocation42_spill]] %s3361_s25  ;;  %s65_s21 = sadd.s32 1, %s3377_s28 }
  0x27   : > { %4175 = sst [smem:[#allocation43_spill]] %s3365_s3  ;;  %p63_p0 = scmp.ge.s32.totalorder %s62_s0, 2 }
  0x28   : > { %4176 = sst [smem:[#allocation44_spill]] %s3369_s26  ;;  %s119_s20 = sadd.s32 1, %s3361_s25 }
  0x29   : > { %4177 = sst [smem:[#allocation45_spill]] %s3377_s28  ;;  %p126_p1 = scmp.ne.s32.totalorder %s3361_s25, %s3357_s2 }
  0x2a   : > { %4178 = sst [smem:[#allocation46_spill]] %s3381_s4  ;;  %p127_p2 = scmp.eq.s32.totalorder %s3381_s4, 0 }
  0x2b   : > { %4179 = sst [smem:[#allocation47_spill]] %s3558_s29  ;;  %s4249_s0 = smov (%p63_p0, %s62_s0), 0 }
  0x2c   : > { %4180 = sst [smem:[#allocation48_spill]] %s4249_s0  ;;  %s4251_s21 = smov (!%p63_p0, %s65_s21), %s3377_s28 }
  0x2d   : > { %s116_s18 = ssub.s32 %s3373_s27, %s4249_s0  ;;  %p3572_p3 = por %p127_p2, %p126_p1 }
  0x2e   : > { %p67_p4 = scmp.ge.s32.totalorder %s4251_s21, 2  ;;  %p117_p5 = scmp.eq.s32.totalorder %s116_s18, 0 }
  0x2f   : > { %p132_p6 = scmp.ne.s32.totalorder %s3357_s2, %s3353_s24  ;;  %p133_p7 = scmp.eq.s32.totalorder %s3558_s29, 0 }
  0x30   : > { %s4253_s21 = smov (%p67_p4, %s4251_s21), 0  ;;  %s557_s13 = sadd.s32 1, %s3349_s23 }
  0x31   : > { %4182 = sst [smem:[#allocation49_spill]] %s4253_s21  ;;  %p3585_p8 = por %p133_p7, %p132_p6 }
  0x32   : > { %s3581_s3 = scalar_select %p117_p5, %s3361_s25, %s119_s20  }
  0x33   : > { %s4184_s0 = scalar_select %p3585_p8, 1, 0 }
  0x34   : > { %4183 = sst [smem:[#allocation50_spill]] %s3581_s3  ;;  %s554_s26 = ssub.s32 %s3377_s28, %s4253_s21 }
  0x35   : > { %4185 = sst [smem:[#allocation51_spill]] %s4184_s0  ;;  %p555_p9 = scmp.eq.s32.totalorder %s554_s26, 0 }
  0x36   : > { %p567_p10 = scmp.ne.s32.totalorder %s3349_s23, %s3345_s22  ;;  %p568_p11 = scmp.eq.s32.totalorder %s3558_s29, 3 }
  0x37   : > { %s3596_s18 = scalar_select %p555_p9, %s3349_s23, %s557_s13  }
  0x38   : > { %p3598_p12 = por %p568_p11, %p567_p10  ;;  %p573_p13 = scmp.ne.s32.totalorder %s3345_s22, %s3341_s1 }
  0x39   : > { %4186 = sst [smem:[#allocation52_spill]] %s3596_s18  ;;  %p574_p0 = scmp.eq.s32.totalorder %s2350_s30, 3 }
  0x3a   : > { %s4187_s24 = scalar_select %p3598_p12, 1, 0 }
  0x3b   : > { %p2351_p1 = scmp.ge.s32.totalorder %s3381_s4, 1  ;;  %p581_p2 = scmp.lt.s32.totalorder %s3381_s4, 5 }
  0x3c   : > { %4188 = sst [smem:[#allocation53_spill]] %s4187_s24  ;;  %p3606_p4 = por %p574_p0, %p573_p13 }
  0x3d   : > { %s4191_s15 = sld [smem:[#allocation64_spill]]  ;;  %p3613_p5 = pnand %p2351_p1, %p581_p2 }
  0x3e   : > { %s4189_s20 = scalar_select %p3606_p4, 1, 0 }
  0x3f   : > { %p2535_p6 = pneg %p3613_p5  ;;  %s3383_s30 = smov [#allocation23]  }
  0x40   : > { %4190 = sst [smem:[#allocation54_spill]] %s4189_s20  ;;  %s601_s3 = sshll.u32 %s3383_s30, 4  ;;  %s602_s3 = int_to_ptr.vmem [resolvable:$true] %s601_s3 }
  0x41   : > { %p2590_p9 = scmp.lt.s32.totalorder %s3381_s4, 4  ;;  %p3622_p10 = pnand %p2535_p6, %p133_p7 }
  0x42   : > { %s3627_s21 = sand.u32 1, %s3361_s25   ;;  %s4195_s17 = sld [smem:[#allocation65_spill]] }
  0x43   : > { %s599_s28 = sshll.u32 %s4191_s15, 4  ;;  %p3631_p11 = pnand %p2590_p9, %p3572_p3  ;;  %s600_s28 = int_to_ptr.hbm [resolvable:$true] %s599_s28 }
  0x44   : > { %2538 = dma.hbm_to_vmem [thread:$0]  (!%p3622_p10), %s600_s28, 16, %s602_s3, [#allocation24]  }
  0x45   : > { %s3384_s20 = smov [#allocation26]   ;;  %s3641_s25 = sand.u32 1, %s3381_s4  }
  0x46   : > { %s627_s1 = sshll.u32 %s3384_s20, 4  ;;  %s4196_s22 = sld [smem:[#allocation58_spill]]  ;;  %s628_s1 = int_to_ptr.vmem [resolvable:$true] %s627_s1 }
  0x47   : > { %s4150_s3 = scalar_lea.sflag [#allocation9], %s3641_s25  ;;  %s3656_s28 = sshll.u32 %s3627_s21, 4 }
  0x48   : > { %s625_s30 = sshll.u32 %s4195_s17, 4  ;;  %s681_s17 = scalar_lea.vmem [#allocation8], %s3627_s21  ;;  %s626_s30 = int_to_ptr.hbm [resolvable:$true] %s625_s30 }
  0x49   : > { %2544 = dma.hbm_to_vmem [thread:$0]  (!%p3622_p10), %s626_s30, 16, %s628_s1, [#allocation27]  }
  0x4a   : > { %s688_s29 = sshll.u32 %s681_s17, 4  ;;  %s3659_s1 = sshll.u32 %s3373_s27, 4  ;;  %s689_s29 = int_to_ptr.vmem [resolvable:$true] %s688_s29 }
  0x4b   : > { %s4197_s6 = sld [smem:[#allocation61_spill]]  ;;  %s724_s20 = scalar_lea.vmem [#allocation11], %s3656_s28 }
  0x4c   : > { %s684_s15 = scalar_lea.hbm %s4196_s22, %s3373_s27  ;;  %s732_s30 = sshll.u32 %s724_s20, 4  ;;  %s733_s30 = int_to_ptr.vmem [resolvable:$true] %s732_s30 }
  0x4d   : > { %s686_s23 = sshll.u32 %s684_s15, 4  ;;  %s3385_s15 = smov 64   ;;  %s687_s23 = int_to_ptr.hbm [resolvable:$true] %s686_s23 }
  0x4e   : > { %2554 = dma.hbm_to_vmem [thread:$0]  (!%p3631_p11), %s687_s23, 16, %s689_s29, %s4150_s3  }
  0x4f   : > { %s4155_s29 = scalar_lea.sflag [#allocation12], %s3641_s25  ;;  %s3386_s23 = smov 4  }
  0x50   : > { %s765_s20 = scalar_lea.hbm %s4119_s8, %s3373_s27  ;;  %s762_s3 = scalar_lea.vmem [#allocation14], %s3627_s21 }
  0x51   : > { %s729_s17 = scalar_lea.hbm %s4197_s6, %s3659_s1  ;;  %s769_s6 = sshll.u32 %s762_s3, 4  ;;  %s770_s6 = int_to_ptr.vmem [resolvable:$true] %s769_s6 }
  0x52   : > { %s730_s14 = sshll.u32 %s729_s17, 4  ;;  %s767_s17 = sshll.u32 %s765_s20, 4  ;;  %s731_s14 = int_to_ptr.hbm [resolvable:$true] %s730_s14  ;;  %s768_s17 = int_to_ptr.hbm [resolvable:$true] %s767_s17 }
  0x53   : > { %2560 = dma.hbm_to_vmem [thread:$0]  (!%p3631_p11), %s731_s14, 256, %s733_s30, %s4155_s29, %s3385_s15, %s3385_s15, %s3386_s23  }
  0x54   : > { %s4156_s4 = scalar_lea.sflag [#allocation15], %s3641_s25  ;;  %s802_s14 = scalar_lea.hbm %s4121_s10, %s3659_s1 }
  0x55   : > { %2566 = dma.hbm_to_vmem [thread:$0]  (!%p3631_p11), %s768_s17, 16, %s770_s6, %s4156_s4  }
  0x56   : > { %s797_s22 = scalar_lea.vmem [#allocation17], %s3656_s28  ;;  %s803_s29 = sshll.u32 %s802_s14, 4  ;;  %s804_s29 = int_to_ptr.hbm [resolvable:$true] %s803_s29 }
  0x57   : > { %s805_s24 = sshll.u32 %s797_s22, 4  ;;  %s794_s20 = scalar_lea.sflag [#allocation18], %s3641_s25  ;;  %s806_s24 = int_to_ptr.vmem [resolvable:$true] %s805_s24 }
  0x58   : > { %2572 = dma.hbm_to_vmem [thread:$0]  (!%p3631_p11), %s804_s29, 256, %s806_s24, %s794_s20, %s3385_s15, %s3385_s15, %s3386_s23  }
  0x59   : > { %s841_s0 = scalar_lea.hbm %s4123_s12, %s3659_s1  ;;  %s836_s30 = scalar_lea.vmem [#allocation20], %s3656_s28 }
  0x5a   : > { %s842_s17 = sshll.u32 %s841_s0, 4  ;;  %s844_s4 = sshll.u32 %s836_s30, 4  ;;  %s843_s17 = int_to_ptr.hbm [resolvable:$true] %s842_s17  ;;  %s845_s4 = int_to_ptr.vmem [resolvable:$true] %s844_s4 }
  0x5b   : > { %s4157_s14 = scalar_lea.sflag [#allocation21], %s3641_s25  ;;  %s610_s24 = sshll.u32 %s4127_s16, 4  ;;  %s611_s24 = int_to_ptr.hbm [resolvable:$true] %s610_s24 }
  0x5c   : > { %2578 = dma.hbm_to_vmem [thread:$0]  (!%p3631_p11), %s843_s17, 256, %s845_s4, %s4157_s14, %s3385_s15, %s3385_s15, %s3386_s23  }
  0x5d   : > { %s3387_s1 = smov [#allocation25]   ;;  %s640_s0 = sshll.u32 %s4130_s19, 4  ;;  %s641_s0 = int_to_ptr.hbm [resolvable:$true] %s640_s0 }
  0x5e   : > { %s612_s28 = sshll.u32 %s3387_s1, 4  ;;  %s3388_s4 = smov [#allocation28]   ;;  %s613_s28 = int_to_ptr.vmem [resolvable:$true] %s612_s28 }
  0x5f   : > { %2541 = dma.hbm_to_vmem [thread:$0]  (!%p3622_p10), %s611_s24, 256, %s613_s28, [#allocation24], %s3385_s15, %s3385_s15, %s3386_s23  }
  0x60   : > { %s642_s17 = sshll.u32 %s3388_s4, 4  ;;  %s4198_s22 = sld [smem:[#allocation57_spill]]  ;;  %s643_s17 = int_to_ptr.vmem [resolvable:$true] %s642_s17 }
  0x61   : > { %2547 = dma.hbm_to_vmem [thread:$0]  (!%p3622_p10), %s641_s0, 16, %s643_s17, [#allocation27]  }
  0x62   : > { %s664_s6 = scalar_lea.vmem [#allocation5], %s3627_s21  ;;  %s662_s15 = scalar_lea.sflag [#allocation6], %s3627_s21 }
  0x63   : > { %s671_s3 = sshll.u32 %s664_s6, 4  ;;  %s4199_s5 = sld [smem:[#allocation60_spill]]  ;;  %s672_s3 = int_to_ptr.vmem [resolvable:$true] %s671_s3 }
  0x64   : > { %s706_s28 = scalar_lea.vmem [#allocation10], %s3627_s21  ;;  %s4200_s17 = scalar_lea.sflag [#allocation9], %s3641_s25 }
  0x65   : > { %s713_s0 = sshll.u32 %s706_s28, 4  ;;  %s782_s23 = scalar_lea.hbm %s4120_s9, %s3373_s27  ;;  %s714_s0 = int_to_ptr.vmem [resolvable:$true] %s713_s0 }
  0x66   : > { %s667_s1 = scalar_lea.hbm %s4198_s22, %s3373_s27  ;;  %s745_s22 = scalar_lea.vmem [#allocation13], %s3627_s21 }
  0x67   : > { %s669_s14 = sshll.u32 %s667_s1, 4  ;;  %s752_s1 = sshll.u32 %s745_s22, 4  ;;  %s670_s14 = int_to_ptr.hbm [resolvable:$true] %s669_s14  ;;  %s753_s1 = int_to_ptr.vmem [resolvable:$true] %s752_s1 }
  0x68   : > { %2551 = dma.hbm_to_vmem [thread:$0]  (!%p3631_p11), %s670_s14, 16, %s672_s3, %s662_s15  }
  0x69   : > { %s709_s24 = scalar_lea.hbm %s4199_s5, %s3373_s27  ;;  %s748_s14 = scalar_lea.hbm %s4118_s7, %s3373_s27 }
  0x6a   : > { %s711_s4 = sshll.u32 %s709_s24, 4  ;;  %s750_s6 = sshll.u32 %s748_s14, 4  ;;  %s712_s4 = int_to_ptr.hbm [resolvable:$true] %s711_s4  ;;  %s751_s6 = int_to_ptr.hbm [resolvable:$true] %s750_s6 }
  0x6b   : > { %2557 = dma.hbm_to_vmem [thread:$0]  (!%p3631_p11), %s712_s4, 16, %s714_s0, %s4200_s17  }
  0x6c   : > { %s4201_s3 = scalar_lea.sflag [#allocation12], %s3641_s25  ;;  %s779_s24 = scalar_lea.vmem [#allocation16], %s3627_s21 }
  0x6d   : > { %2563 = dma.hbm_to_vmem [thread:$0]  (!%p3631_p11), %s751_s6, 16, %s753_s1, %s4201_s3  }
  0x6e   : > { %s786_s28 = sshll.u32 %s779_s24, 4  ;;  %s784_s0 = sshll.u32 %s782_s23, 4  ;;  %s787_s28 = int_to_ptr.vmem [resolvable:$true] %s786_s28  ;;  %s785_s0 = int_to_ptr.hbm [resolvable:$true] %s784_s0 }
  0x6f   : > { %s4202_s4 = scalar_lea.sflag [#allocation15], %s3641_s25  ;;  %s821_s29 = scalar_lea.hbm %s4122_s11, %s3373_s27 }
  0x70   : > { %2569 = dma.hbm_to_vmem [thread:$0]  (!%p3631_p11), %s785_s0, 16, %s787_s28, %s4202_s4  }
  0x71   : > { %s818_s14 = scalar_lea.vmem [#allocation19], %s3627_s21  ;;  %s823_s1 = sshll.u32 %s821_s29, 4  ;;  %s824_s1 = int_to_ptr.hbm [resolvable:$true] %s823_s1 }
  0x72   : > { %s825_s22 = sshll.u32 %s818_s14, 4  ;;  %s4203_s15 = sld [smem:[#allocation62_spill]]  ;;  %s826_s22 = int_to_ptr.vmem [resolvable:$true] %s825_s22 }
  0x73   : > { %2575 = dma.hbm_to_vmem [thread:$0]  (!%p3631_p11), %s824_s1, 16, %s826_s22, %s794_s20  }
  0x74   : > { %s857_s23 = scalar_lea.vmem [#allocation22], %s3627_s21  ;;  %s4204_s28 = scalar_lea.sflag [#allocation21], %s3641_s25 }
  0x75   : > { %s864_s24 = sshll.u32 %s857_s23, 4  ;;  %s3779_s4 = sand.u32 (!%p3613_p5), 1, %s3357_s2   ;;  %s865_s24 = int_to_ptr.vmem [resolvable:$true] %s864_s24 }
  0x76   : > { %873 = sbr.rel (%p3613_p5) target bundleno = 2811 (0xafb), region = 100  ;;  %s876_s20 = scalar_lea.sflag (!%p3613_p5), [#allocation6], %s3779_s4 }
  0x77   : > { %s878_s17 = scalar_lea.vmem (!%p3613_p5), [#allocation5], %s3779_s4 }
  0x78   : > { %s860_s18 = scalar_lea.hbm %s4203_s15, %s3373_s27 }
  0x79   : > { %s862_s5 = sshll.u32 %s860_s18, 4  ;;  %s863_s5 = int_to_ptr.hbm [resolvable:$true] %s862_s5 }
  0x7a   : > { %2581 = dma.hbm_to_vmem [thread:$0]  (!%p3631_p11), %s863_s5, 16, %s865_s24, %s4204_s28  }
  0x7b   : > { %3304 = dma.done.wait (%p3585_p8), %s876_s20, 16  }
  0x7c   : > { %3306 = vsyncadd (%p3585_p8), %s876_s20, 4294967280  ;;  %s4206_s21 = sld [smem:[#allocation47_spill]]  ;;  %s887_s13 = scalar_lea.vmem [#allocation8], %s3779_s4 }
  0x82   : > { %s884_s5 = sand.u32 1, %s4206_s21  }
  0x83   : > { %s885_s25 = scalar_lea.sflag [#allocation9], %s884_s5 }
  0x84   : > { %3308 = dma.done.wait (%p3585_p8), %s885_s25, 32  }
  0x85   : > { %3310 = vsyncadd (%p3585_p8), %s885_s25, 4294967264  ;;  %s3794_s26 = sshll.u32 %s3779_s4, 4  ;;  %s903_s29 = scalar_lea.sflag [#allocation12], %s884_s5 }
  0x86   : > { %3312 = dma.done.wait (%p3585_p8), %s903_s29, 272  }
  0x87   : > { %3314 = vsyncadd (%p3585_p8), %s903_s29, 4294967024  ;;  %s922_s1 = scalar_lea.sflag [#allocation15], %s884_s5 }
  0x88   : > { %3316 = dma.done.wait (%p3585_p8), %s922_s1, 32  }
  0x89   : > { %3318 = vsyncadd (%p3585_p8), %s922_s1, 4294967264  ;;  %s940_s15 = scalar_lea.sflag [#allocation18], %s884_s5 }
  0x8a   : > { %3320 = dma.done.wait (%p3585_p8), %s940_s15, 272  }
  0x8b   : > { %3322 = vsyncadd (%p3585_p8), %s940_s15, 4294967024  ;;  %s959_s24 = scalar_lea.sflag [#allocation21], %s884_s5 }
  0x8c   : > { %3324 = dma.done.wait (%p3585_p8), %s959_s24, 272  }
  0x8d   : > { %3326 = vsyncadd (%p3585_p8), %s959_s24, 4294967024 }
  0x8e   : > { %3328 = dma.done.wait (%p133_p7), [#allocation24], 272  }
  0x8f   : > { %3330 = vsyncadd (%p133_p7), [#allocation24], 4294967024 }
  0x90   : > { %3332 = dma.done.wait (%p133_p7), [#allocation27], 32  }
  0x91   : > { %3334 = vsyncadd (%p133_p7), [#allocation27], 4294967264  ;;  %s4207_s5 = sld [smem:[#allocation40_spill]] }
  0x92   : > { %s4208_s25 = sld [smem:[#allocation44_spill]] }
  0x93   : > { %s4209_s29 = sld [smem:[#allocation43_spill]] }
  0x94   : > { %s4210_s28 = sld [smem:[#allocation55_spill]] }
  0x95   : > { %s4211_s22 = sld [smem:[#allocation59_spill]] }
  0x97   : > { %s1098_s0 = sand.u32 1, %s4207_s5  }
  0x98   : > { %p1101_p3 = scmp.lt.s32.totalorder %s4208_s25, 1  ;;  %s2374_s1 = sshll.u32 %s1098_s0, 4 }
  0x99   : > { %p1106_p8 = scmp.lt.s32.totalorder %s4209_s29, 1  ;;  %s3846_s30 = scalar_lea.vmem [#allocation29], %s2374_s1 }
  0x9a   : > { %s4255_s25 = smov (!%p1101_p3, %s4208_s25), 1  ;;  %p2379_p7 = scmp.ne.s32.totalorder %s4209_s29, 0 }
  0x9b   : > { %s1107_s15 = scalar_select %p1106_p8, %s4209_s29, 1 }
  0x9c   : > { %s2474_s24 = sshll.u32 %s4255_s25, 4  ;;  %1115 = sbr.rel (%p2379_p7) target bundleno = 164 (0xa4), region = 164 }
  0x9d   : > { %s3839_s3 = scalar_lea.vmem %s4210_s28, %s2474_s24  ;;  %s2475_s21 = sshll.u32 %s1107_s15, 4 }
  0x9e   : > { %s3844_s14 = scalar_lea.vmem %s4211_s22, %s2475_s21 }
  0xa1   : > { %v1116_v0 = vld [vmem:[%s3839_s3] sm:$0xff]  ;;  %vm1118_vm0 = vcmask 261120   ;;  %v1117_v1 = vld [vmem:[%s3839_s3 + $0x8] sm:$0xff] }
  0xa2   : > { %1119 = vst.msk [vmem:[#allocation2] sm:$0xff] %vm1118_vm0, %v1116_v0 }
  0xa3   : > { %1120 = vst.msk [vmem:[#allocation2 + $0x8] sm:$0xff] %vm1118_vm0, %v1117_v1 }
  0xa4 PF: > { %vm1127_vm1 = vcmask 261120   ;;  %v3389_v6 = vmov 32.0   ;;  %v2477_v23 = vld [vmem:[%s3844_s14 + $0x8] sm:$0xff]  ;;  %v2476_v25 = vld [vmem:[%s3844_s14] sm:$0xff]  ;;  %s4212_s14 = scalar_lea.vmem [#allocation10], %s3779_s4  ;;  %vm1227_vm9 = vcmask 785408  }
  0xa5   : > { %2723 = vrcp.f32 %v3389_v6  ;;  %1219 = vmatpush.bf16.msra.mxu0 %v2477_v23  ;;  %v2715_v44 = vld [vmem:[%s878_s17] ss:$0 sm:$0xff]  ;;  %s3390_s17 = smov 104   ;;  %s3392_s22 = smov 112   ;;  %vm1267_vm10 = vcmask 64512   ;;  %vm1369_vm11 = vcmask 130048  }
  0xa6   : > { %v2716_v49 = vld [vmem:[%s887_s13] ss:$0 sm:$0xff]  ;;  %s3391_s13 = smov 120   ;;  %s3393_s6 = smov 96   ;;  %vm1576_vm12 = vcmask 130112   ;;  %vm1587_vm13 = vcmask 195712  }
  0xa7   : > { %v2717_v54 = vld [vmem:[%s4212_s14] ss:$0 sm:$0xff]  ;;  %s4213_s28 = sld [smem:[#allocation56_spill]]  ;;  %s3394_s29 = smov 64   ;;  %vm1598_vm14 = vcmask 261312  }
  0xa8   : > { %s3395_s1 = smov 24   ;;  %s3396_s15 = smov 8  }
  0xa9   : > { %v3851_v2 = vld [vmem:[#allocation2] sm:$0xff]  ;;  %1220 = vmatpush.bf16.msra.mxu0 %v2476_v25  ;;  %s3397_s24 = smov 16   ;;  %s4215_s21 = scalar_lea.vmem [#allocation11], %s3794_s26 }
  0xaa   : > { %v1128_v3 = vsel %vm1127_vm1, %v3851_v2, 0.0  ;;  %v3855_v4 = vld [vmem:[#allocation2 + $0x8] sm:$0xff]  ;;  %s4216_s14 = smov %s4215_s21  ;;  %s4221_s18 = scalar_lea.vmem [#allocation16], %s3779_s4 }
  0xab   : > { %1129 = vadd.xlane.f32.xlu0 %v1128_v3  ;;  %v1131_v5 = vsel %vm1127_vm1, %v3855_v4, 0.0  ;;  %v2724_v7 = vpop.eup %2723  ;;  %s4222_s23 = scalar_lea.vmem [#allocation20], %s3794_s26  ;;  %s4224_s5 = scalar_lea.vmem [#allocation19], %s3779_s4 }
  0xac   : > { %v1135_v8 = vmul.f32 32.0, %v2724_v7  ;;  %vm1139_vm2 = vweird.f32 %v2724_v7  ;;  %s4226_s25 = sld [smem:[#allocation43_spill]] }
  0xad   : > { %s4214_s20 = smov %s4213_s28 }
  0xae   : > { %v1136_v9 = vsub.f32 1.0, %v1135_v8 }
  0xb0   : > { %v1137_v10 = vmul.f32 %v2724_v7, %v1136_v9 }
  0xb2   : > { %v1138_v11 = vadd.f32 %v2724_v7, %v1137_v10  ;;  %p2424_p13 = scmp.ne.s32.totalorder %s4226_s25, 1 }
  0xb3   : > { %1132 = vadd.xlane.f32.xlu0 %v1131_v5 }
  0xb4   : > { %v3859_v12 = vsel %vm1139_vm2, %v2724_v7, %v1138_v11 }
 0x11e   : > { %v1130_v13 = vpop.xlane.xlu0 %1129 }
 0x11f   : > { %v1141_v14 = vmul.f32 %v3859_v12, %v1130_v13 }
 0x121   : > { %v1143_v15 = vsub.f32 %v3851_v2, %v1141_v14 }
 0x123   : > { %v1145_v16 = vmul.f32 %v1143_v15, %v1143_v15 }
 0x125   : > { %v1147_v17 = vsel %vm1127_vm1, %v1145_v16, 0.0 }
 0x126   : > { %1148 = vadd.xlane.f32.xlu1 %v1147_v17  ;;  %v1133_v18 = vpop.xlane.xlu0 %1132 }
 0x127   : > { %v1142_v19 = vmul.f32 %v3859_v12, %v1133_v18 }
 0x129   : > { %v1144_v20 = vsub.f32 %v3855_v4, %v1142_v19 }
 0x12b   : > { %v1146_v21 = vmul.f32 %v1144_v20, %v1144_v20 }
 0x12d   : > { %v1150_v22 = vsel %vm1127_vm1, %v1146_v21, 0.0 }
 0x12e   : > { %1151 = vadd.xlane.f32.xlu1 %v1150_v22 }
 0x199   : > { %v1149_v24 = vpop.xlane.xlu1 %1148 }
 0x19a   : > { %v1153_v26 = vmul.f32 %v1149_v24, %v3859_v12 }
 0x19c   : > { %v1155_v27 = vadd.f32 1e-05, %v1153_v26 }
 0x19e   : > { %2725 = vrsqrt.f32 %v1155_v27  ;;  %vm1163_vm4 = vweird.f32 %v1155_v27 }
 0x1a1   : > { %v1152_v28 = vpop.xlane.xlu1 %1151 }
 0x1a2   : > { %v1154_v29 = vmul.f32 %v1152_v28, %v3859_v12 }
 0x1a4   : > { %v2726_v30 = vpop.eup %2725  ;;  %v1156_v31 = vadd.f32 1e-05, %v1154_v29 }
 0x1a5   : > { %v1158_v32 = vmul.f32 %v2726_v30, %v1155_v27  ;;  %vm1164_vm3 = vweird.f32 %v2726_v30 }
 0x1a6   : > { %2727 = vrsqrt.f32 %v1156_v31  ;;  %vm1165_vm5 = vmor %vm1163_vm4, %vm1164_vm3  ;;  %vm1173_vm7 = vweird.f32 %v1156_v31 }
 0x1a7   : > { %v1159_v33 = vmul.f32 %v2726_v30, %v1158_v32 }
 0x1a9   : > { %v1160_v34 = vmul.f32 0.5, %v1159_v33 }
 0x1ab   : > { %v1161_v35 = vsub.f32 1.5, %v1160_v34 }
 0x1ac   : > { %v2728_v36 = vpop.eup %2727 }
 0x1ad   : > { %v1162_v37 = vmul.f32 %v2726_v30, %v1161_v35  ;;  %v1168_v38 = vmul.f32 %v2728_v36, %v1156_v31  ;;  %vm1174_vm6 = vweird.f32 %v2728_v36 }
 0x1ae   : > { %vm1175_vm8 = vmor %vm1173_vm7, %vm1174_vm6 }
 0x1af   : > { %v1169_v39 = vmul.f32 %v2728_v36, %v1168_v38  ;;  %v1166_v40 = vsel %vm1165_vm5, %v2726_v30, %v1162_v37  ;;  %v1123_v38 = vld [vmem:[%s4213_s28] sm:$0xff]  ;;  %s4223_s28 = smov %s4222_s23 }
 0x1b0   : > { %v1177_v43 = vmul.f32 %v1166_v40, %v1143_v15 }
 0x1b1   : > { %v1170_v41 = vmul.f32 0.5, %v1169_v39 }
 0x1b2   : > { %v1182_v48 = vmul.f32 %v2715_v44, %v1177_v43 }
 0x1b3   : > { %v1171_v42 = vsub.f32 1.5, %v1170_v41 }
 0x1b4   : > { %v1187_v51 = vadd.f32 %v2716_v49, %v1182_v48 }
 0x1b5   : > { %v1172_v45 = vmul.f32 %v2728_v36, %v1171_v42 }
 0x1b7   : > { %v1176_v46 = vsel %vm1175_vm8, %v2728_v36, %v1172_v45  ;;  %v1124_v45 = vld [vmem:[%s4214_s20 + $0x8] sm:$0xff] }
 0x1b8   : > { %v1178_v47 = vmul.f32 %v1176_v46, %v1144_v20 }
 0x1ba   : > { %v1183_v50 = vmul.f32 %v2715_v44, %v1178_v47 }
 0x1bc   : > { %v1188_v52 = vadd.f32 %v2716_v49, %v1183_v50 }
 0x1be   : > { %v1189_v53 = vpack.c.bf16 %v1188_v52, %v1187_v51 }
 0x1c0   : > { %2388 = vmatmul.msk.bf16.vlgmr.msra.gmra.mxu0 %vm1127_vm1, %v1189_v53 }
 0x23d   : > { %v1222_v55 = vpop.f32.mrf.mxu0 }
 0x23e   : > { %v1223_v56 = vadd.f32 %v2717_v54, %v1222_v55 }
 0x240   : > { %1228 = vst.msk [vmem:[#allocation3] sm:$0xff] %vm1227_vm9, %v1223_v56 }
 0x245   : > { %v1224_v57 = vpop.f32.mrf.mxu0 }
 0x246   : > { %v1225_v58 = vadd.f32 %v2717_v54, %v1224_v57 }
 0x247   : > { %v1230_v59 = vld [vmem:[#allocation3] sm:$0xff] }
 0x248   : > { %1229 = vst.msk [vmem:[#allocation3 + $0x8] sm:$0xff] %vm1227_vm9, %v1225_v58  ;;  %v1252_v60 = vpack.c.bf16 %v1230_v59, %v1230_v59 }
 0x24a   : > { %v1262_v0 = vunpack.c.l.b16 %v1252_v60 }
 0x24f   : > { %v1231_v61 = vld [vmem:[#allocation3 + $0x8] sm:$0xff] }
 0x250   : > { %v2710_v62 = vpack.i.bf16 %v1231_v61, %v1230_v59  ;;  %v1253_v63 = vpack.c.bf16 %v1231_v61, %v1231_v61 }
 0x252   : > { %2711 = vrot.lane.b32.xlu0 %v2710_v62, %s3390_s17  ;;  %2701 = vrot.lane.b32.xlu2 %v2710_v62, %s3391_s13  ;;  %v1263_v1 = vunpack.c.l.b16 %v1253_v63  ;;  %s4217_s17 = scalar_lea.vmem [#allocation13], %s3779_s4  ;;  %s4218_s13 = scalar_lea.vmem [#allocation17], %s3794_s26 }
 0x253   : > { %s4225_s26 = scalar_lea.vmem [#allocation22], %s3779_s4 }
 0x254   : > { %v3878_v3 = vpack.c.b16 %v1263_v1, %v1262_v0 }
 0x25a   : > { %2706 = vrot.lane.b32.xlu2 %v2710_v62, %s3392_s22  ;;  %s4219_s22 = smov %s4218_s13 }
 0x2ac   : > { %v2702_v5 = vpop.permute.xlu2 %2701 }
 0x2ad   : > { %v2704_v6 = vunpack.i.h.bf16 %v2702_v5  ;;  %v2703_v7 = vunpack.i.l.bf16 %v2702_v5 }
 0x2af   : > { %v1255_v8 = vpack.c.bf16 %v2704_v6, %v2704_v6  ;;  %v1254_v9 = vpack.c.bf16 %v2703_v7, %v2703_v7 }
 0x2b1   : > { %v1291_v10 = vunpack.c.l.b16 %v1255_v8  ;;  %v1290_v11 = vunpack.c.l.b16 %v1254_v9 }
 0x2b3   : > { %v3880_v13 = vpack.c.b16 %v1291_v10, %v1290_v11 }
 0x2b4   : > { %v2707_v14 = vpop.permute.xlu2 %2706 }
 0x2b5   : > { %v2709_v15 = vunpack.i.h.bf16 %v2707_v14  ;;  %v2708_v16 = vunpack.i.l.bf16 %v2707_v14  ;;  %1293 = vrot.lane.b32.xlu1 %v3880_v13, %s3393_s6 }
 0x2b7   : > { %v1257_v17 = vpack.c.bf16 %v2709_v15, %v2709_v15  ;;  %v1256_v18 = vpack.c.bf16 %v2708_v16, %v2708_v16 }
 0x2b9   : > { %v1318_v19 = vunpack.c.l.b16 %v1257_v17  ;;  %v1317_v20 = vunpack.c.l.b16 %v1256_v18 }
 0x2bb   : > { %v3883_v21 = vpack.c.b16 %v1318_v19, %v1317_v20 }
 0x2bd   : > { %1320 = vrot.lane.b32.xlu2 %v3883_v21, %s3393_s6 }
 0x2c4   : > { %v2712_v22 = vpop.permute.xlu0 %2711 }
 0x2c5   : > { %v2714_v23 = vunpack.i.h.bf16 %v2712_v22  ;;  %v2713_v24 = vunpack.i.l.bf16 %v2712_v22 }
 0x2c7   : > { %v1259_v25 = vpack.c.bf16 %v2714_v23, %v2714_v23  ;;  %v1258_v26 = vpack.c.bf16 %v2713_v24, %v2713_v24 }
 0x2c9   : > { %v1345_v27 = vunpack.c.l.b16 %v1259_v25  ;;  %v1344_v28 = vunpack.c.l.b16 %v1258_v26 }
 0x2cb   : > { %v3886_v29 = vpack.c.b16 %v1345_v27, %v1344_v28 }
 0x2cd   : > { %1347 = vrot.lane.b32.xlu2 %v3886_v29, %s3393_s6 }
 0x2d5   : > { %1265 = vrot.lane.b32.xlu2 %v3878_v3, %s3393_s6  ;;  %s4220_s6 = scalar_lea.vmem [#allocation14], %s3779_s4 }
 0x317   : > { %v1321_v30 = vpop.permute.xlu2 %1320 }
 0x318   : > { %v1326_v31 = vsel %vm1267_vm10, %v1321_v30, 0 }
 0x319   : > { %1335 = vmatpush.bf16.xpose.msra.mxu3 %v1326_v31 }
 0x320   : > { %2391 = vmatmul.msk.bf16.vlgmr.msra.gmra.mxu3 %vm1267_vm10, %v3883_v21 }
 0x327   : > { %v1348_v32 = vpop.permute.xlu2 %1347  ;;  %v1294_v33 = vpop.permute.xlu1 %1293 }
 0x328   : > { %v1299_v34 = vsel %vm1267_vm10, %v1294_v33, 0  ;;  %v1353_v35 = vsel %vm1267_vm10, %v1348_v32, 0 }
 0x329   : > { %1308 = vmatpush.bf16.xpose.msra.mxu2 %v1299_v34  ;;  %1362 = vmatpush.bf16.xpose.msrb.mxu0 %v1353_v35 }
 0x32f   : > { %v1266_v36 = vpop.permute.xlu2 %1265 }
 0x330   : > { %2390 = vmatmul.msk.bf16.vlgmr.msra.gmra.mxu2 %vm1267_vm10, %v3880_v13  ;;  %2392 = vmatmul.msk.bf16.vlgmr.msrb.gmra.mxu0 %vm1267_vm10, %v3886_v29  ;;  %v1272_v37 = vsel %vm1267_vm10, %v1266_v36, 0 }
 0x331   : > { %1281 = vmatpush.bf16.xpose.msra.mxu1 %v1272_v37 }
 0x338   : > { %2389 = vmatmul.msk.bf16.vlgmr.msra.gmra.mxu1 %vm1267_vm10, %v3878_v3 }
 0x3a3   : > { %v1337_v39 = vpop.f32.mrf.mxu3 }
 0x3a4   : > { %v1338_v40 = vadd.f32 %v1337_v39, %v1123_v38 }
 0x3a6   : > { %v1382_v41 = vsel %vm1369_vm11, %v1338_v40, -inf }
 0x3a7   : > { %1383 = vmax.xlane.f32.xlu1 %v1382_v41 }
 0x3ab   : > { %v1339_v49 = vpop.f32.mrf.mxu3 }
 0x3ac   : > { %v1340_v51 = vadd.f32 %v1339_v49, %v1124_v45 }
 0x3ad   : > { %v1364_v42 = vpop.f32.mrf.mxu0 }
 0x3ae   : > { %v1385_v55 = vsel %vm1369_vm11, %v1340_v51, -inf  ;;  %v1365_v57 = vadd.f32 %v1364_v42, %v1123_v38 }
 0x3b0   : > { %v1388_v59 = vsel %vm1369_vm11, %v1365_v57, -inf }
 0x3b3   : > { %v1310_v43 = vpop.f32.mrf.mxu2 }
 0x3b4   : > { %v1311_v44 = vadd.f32 %v1310_v43, %v1123_v38 }
 0x3b5   : > { %v1366_v46 = vpop.f32.mrf.mxu0  ;;  %v1283_v54 = vpop.f32.mrf.mxu1 }
 0x3b6   : > { %v1367_v47 = vadd.f32 %v1366_v46, %v1124_v45  ;;  %v1376_v48 = vsel %vm1369_vm11, %v1311_v44, -inf  ;;  %v3913_v58 = vadd.f32 %v1283_v54, %v1123_v38 }
 0x3b7   : > { %1377 = vmax.xlane.f32.xlu0 %v1376_v48 }
 0x3b8   : > { %v1391_v50 = vsel %vm1369_vm11, %v1367_v47, -inf  ;;  %v1370_v60 = vsel %vm1369_vm11, %v3913_v58, -inf }
 0x3b9   : > { %1392 = vmax.xlane.f32.xlu1 %v1391_v50 }
 0x3bb   : > { %v1312_v52 = vpop.f32.mrf.mxu2 }
 0x3bc   : > { %v1313_v53 = vadd.f32 %v1312_v52, %v1124_v45 }
 0x3bd   : > { %v1285_v61 = vpop.f32.mrf.mxu1 }
 0x3be   : > { %v1379_v56 = vsel %vm1369_vm11, %v1313_v53, -inf  ;;  %v1286_v62 = vadd.f32 %v1285_v61, %v1124_v45 }
 0x3bf   : > { %1386 = vmax.xlane.f32.xlu0 %v1385_v55  ;;  %1380 = vmax.xlane.f32.xlu2 %v1379_v56 }
 0x3c0   : > { %v1373_v63 = vsel %vm1369_vm11, %v1286_v62, -inf }
 0x3c7   : > { %1389 = vmax.xlane.f32.xlu2 %v1388_v59  ;;  %1371 = vmax.xlane.f32.xlu0 %v1370_v60 }
 0x3cf   : > { %1374 = vmax.xlane.f32.xlu2 %v1373_v63 }
 0x41a   : > { %v1384_v0 = vpop.xlane.xlu1 %1383 }
 0x41b   : > { %v1398_v1 = vsub.f32 %v1338_v40, %v1384_v0 }
 0x41d   : > { %v1410_v5 = vmul.f32 1.442695, %v1398_v1 }
 0x41f   : > { %2729 = vpow2.f32 %v1410_v5 }
 0x425   : > { %v3919_v6 = vpop.eup %2729 }
 0x426   : > { %v1430_v7 = vsel %vm1369_vm11, %v3919_v6, 0.0 }
 0x427   : > { %1431 = vadd.xlane.f32.xlu2 %v1430_v7 }
 0x42a   : > { %v1378_v8 = vpop.xlane.xlu0 %1377 }
 0x42b   : > { %v1396_v9 = vsub.f32 %v1311_v44, %v1378_v8 }
 0x42c   : > { %v1393_v10 = vpop.xlane.xlu1 %1392 }
 0x42d   : > { %v1406_v11 = vmul.f32 1.442695, %v1396_v9  ;;  %v1401_v14 = vsub.f32 %v1367_v47, %v1393_v10 }
 0x42f   : > { %2731 = vpow2.f32 %v1406_v11  ;;  %v1416_v15 = vmul.f32 1.442695, %v1401_v14 }
 0x431   : > { %2733 = vpow2.f32 %v1416_v15 }
 0x432   : > { %v1387_v16 = vpop.xlane.xlu0 %1386  ;;  %v1381_v17 = vpop.xlane.xlu2 %1380 }
 0x433   : > { %v1399_v18 = vsub.f32 %v1340_v51, %v1387_v16  ;;  %v1397_v30 = vsub.f32 %v1313_v53, %v1381_v17 }
 0x435   : > { %v3923_v19 = vpop.eup %2731  ;;  %v1412_v20 = vmul.f32 1.442695, %v1399_v18  ;;  %v1408_v32 = vmul.f32 1.442695, %v1397_v30 }
 0x436   : > { %v1424_v22 = vsel %vm1369_vm11, %v3923_v19, 0.0 }
 0x437   : > { %v2734_v23 = vpop.eup %2733  ;;  %2735 = vpow2.f32 %v1412_v20  ;;  %1425 = vadd.xlane.f32.xlu1 %v1424_v22 }
 0x438   : > { %v1439_v24 = vsel %vm1369_vm11, %v2734_v23, 0.0 }
 0x439   : > { %1440 = vadd.xlane.f32.xlu2 %v1439_v24 }
 0x43a   : > { %v1390_v25 = vpop.xlane.xlu2 %1389  ;;  %v1372_v40 = vpop.xlane.xlu0 %1371 }
 0x43b   : > { %v1400_v26 = vsub.f32 %v1365_v57, %v1390_v25  ;;  %v1394_v41 = vsub.f32 %v3913_v58, %v1372_v40 }
 0x43d   : > { %v3928_v27 = vpop.eup %2735  ;;  %v1414_v28 = vmul.f32 1.442695, %v1400_v26  ;;  %v1402_v43 = vmul.f32 1.442695, %v1394_v41 }
 0x43e   : > { %v1433_v31 = vsel %vm1369_vm11, %v3928_v27, 0.0 }
 0x43f   : > { %1434 = vadd.xlane.f32.xlu1 %v1433_v31  ;;  %2737 = vpow2.f32 %v1414_v28 }
 0x440   : > { %2739 = vpow2.f32 %v1408_v32 }
 0x442   : > { %v1375_v37 = vpop.xlane.xlu2 %1374 }
 0x443   : > { %v1395_v38 = vsub.f32 %v1286_v62, %v1375_v37 }
 0x445   : > { %v2738_v33 = vpop.eup %2737  ;;  %v1404_v39 = vmul.f32 1.442695, %v1395_v38 }
 0x446   : > { %v1436_v34 = vsel %vm1369_vm11, %v2738_v33, 0.0  ;;  %v2740_v35 = vpop.eup %2739 }
 0x447   : > { %1437 = vadd.xlane.f32.xlu0 %v1436_v34  ;;  %v1427_v36 = vsel %vm1369_vm11, %v2740_v35, 0.0  ;;  %2741 = vpow2.f32 %v1404_v39 }
 0x448   : > { %2743 = vpow2.f32 %v1402_v43  ;;  %v2478_v43 = vld [vmem:[%s4216_s14] sm:$0xff] }
 0x44d   : > { %v3939_v42 = vpop.eup %2741 }
 0x44e   : > { %v1421_v44 = vsel %vm1369_vm11, %v3939_v42, 0.0 }
 0x44f   : > { %1428 = vadd.xlane.f32.xlu0 %v1427_v36 }
 0x451   : > { %1546 = vrot.lane.b32.xlu2 %v3886_v29, %s3394_s29 }
 0x458   : > { %1496 = vrot.lane.b32.xlu1 %v3880_v13, %s3394_s29  ;;  %v2744_v13 = vpop.eup %2743 }
 0x459   : > { %1471 = vrot.lane.b32.xlu2 %v3878_v3, %s3394_s29  ;;  %v1418_v3 = vsel %vm1369_vm11, %v2744_v13, 0.0 }
 0x463   : > { %1521 = vrot.lane.b32.xlu0 %v3883_v21, %s3394_s29  ;;  %s4227_s29 = sld [smem:[#allocation63_spill]] (!%p2424_p13) }
 0x482   : > { %1422 = vadd.xlane.f32.xlu1 %v1421_v44 }
 0x48d   : > { %1419 = vadd.xlane.f32.xlu0 %v1418_v3 }
 0x49a   : > { %v1432_v21 = vpop.xlane.xlu2 %1431 }
 0x4aa   : > { %v1426_v46 = vpop.xlane.xlu1 %1425 }
 0x4ac   : > { %v1441_v29 = vpop.xlane.xlu2 %1440 }
 0x4ad   : > { %2745 = vrcp.f32 %v1441_v29 }
 0x4b2   : > { %v1435_v51 = vpop.xlane.xlu1 %1434 }
 0x4b3   : > { %v2746_v48 = vpop.eup %2745 }
 0x4b4   : > { %v1547_v45 = vpop.permute.xlu2 %1546  ;;  %v1457_v50 = vmul.f32 %v2746_v48, %v2734_v23 }
 0x4b5   : > { %1559 = vmatpush.bf16.msra.mxu0 %v1547_v45 }
 0x4b6   : > { %v1465_v53 = vpack.c.bf16 %v1457_v50, %v1457_v50 }
 0x4b8   : > { %v1544_v59 = vunpack.c.l.b16 %v1465_v53 }
 0x4ba   : > { %v1438_v47 = vpop.xlane.xlu0 %1437 }
 0x4bb   : > { %2747 = vrcp.f32 %v1438_v47 }
 0x4bc   : > { %v1472_v49 = vpop.permute.xlu2 %1471  ;;  %2749 = vrcp.f32 %v1426_v46 }
 0x4bd   : > { %1484 = vmatpush.bf16.msrb.mxu1 %v1472_v49  ;;  %2751 = vrcp.f32 %v1435_v51  ;;  %v2718_v49 = vld [vmem:[%s4217_s17] ss:$0 sm:$0xff] }
 0x4c1   : > { %v2748_v52 = vpop.eup %2747 }
 0x4c2   : > { %v1456_v54 = vmul.f32 %v2748_v52, %v2738_v33  ;;  %v1429_v55 = vpop.xlane.xlu0 %1428  ;;  %v2750_v56 = vpop.eup %2749 }
 0x4c3   : > { %2753 = vrcp.f32 %v1429_v55  ;;  %v1452_v58 = vmul.f32 %v2750_v56, %v3923_v19  ;;  %v2752_v61 = vpop.eup %2751 }
 0x4c4   : > { %2755 = vrcp.f32 %v1432_v21  ;;  %v1464_v57 = vpack.c.bf16 %v1456_v54, %v1456_v54  ;;  %v1455_v8 = vmul.f32 %v2752_v61, %v3928_v27 }
 0x4c5   : > { %v1460_v5 = vpack.c.bf16 %v1452_v58, %v1452_v58 }
 0x4c6   : > { %v1543_v60 = vunpack.c.l.b16 %v1464_v57  ;;  %v1463_v15 = vpack.c.bf16 %v1455_v8, %v1455_v8 }
 0x4c7   : > { %v1493_v11 = vunpack.c.l.b16 %v1460_v5  ;;  %v2481_v5 = vld [vmem:[%s4218_s13 + $0x8] sm:$0xff] }
 0x4c8   : > { %v1545_v62 = vpack.c.b16 %v1544_v59, %v1543_v60  ;;  %v1519_v18 = vunpack.c.l.b16 %v1463_v15 }
 0x4c9   : > { %v2754_v63 = vpop.eup %2753 }
 0x4ca   : > { %v1497_v0 = vpop.permute.xlu1 %1496  ;;  %v2756_v1 = vpop.eup %2755  ;;  %v1453_v7 = vmul.f32 %v2754_v63, %v2740_v35  ;;  %2396 = vmatmul.msk.bf16.vlgmr.msra.gmra.mxu0 %vm1369_vm11, %v1545_v62 }
 0x4cb   : > { %1509 = vmatpush.bf16.msrb.mxu2 %v1497_v0  ;;  %v1454_v10 = vmul.f32 %v2756_v1, %v3919_v6 }
 0x4cc   : > { %v1461_v9 = vpack.c.bf16 %v1453_v7, %v1453_v7 }
 0x4cd   : > { %v1462_v17 = vpack.c.bf16 %v1454_v10, %v1454_v10 }
 0x4ce   : > { %v1494_v14 = vunpack.c.l.b16 %v1461_v9  ;;  %v2480_v9 = vld [vmem:[%s4219_s22] sm:$0xff] }
 0x4cf   : > { %v1518_v19 = vunpack.c.l.b16 %v1462_v17  ;;  %1729 = vmatpush.bf16.msra.mxu2 %v2481_v5 }
 0x4d0   : > { %v1495_v16 = vpack.c.b16 %v1494_v14, %v1493_v11 }
 0x4d1   : > { %v1520_v22 = vpack.c.b16 %v1519_v18, %v1518_v19 }
 0x4d2   : > { %2394 = vmatmul.msk.bf16.vlgmr.msrb.gmra.mxu2 %vm1369_vm11, %v1495_v16 }
 0x4d3   : > { %1730 = vmatpush.bf16.msra.mxu2 %v2480_v9 }
 0x4d5   : > { %v1522_v20 = vpop.permute.xlu0 %1521 }
 0x4d6   : > { %1534 = vmatpush.bf16.msrb.mxu3 %v1522_v20 }
 0x4d9   : > { %2395 = vmatmul.msk.bf16.vlgmr.msrb.gmra.mxu3 %vm1369_vm11, %v1520_v22 }
 0x4f5   : > { %v1423_v23 = vpop.xlane.xlu1 %1422 }
 0x4f6   : > { %2757 = vrcp.f32 %v1423_v23 }
 0x4fc   : > { %v2758_v25 = vpop.eup %2757 }
 0x4fd   : > { %v1451_v6 = vmul.f32 %v2758_v25, %v3939_v42  ;;  %v2479_v42 = vld [vmem:[%s4215_s21 + $0x8] sm:$0xff]  ;;  %s4228_s21 = sld [smem:[#allocation66_spill]] (!%p2424_p13) }
 0x4fe   : > { %1633 = vmatpush.bf16.msra.mxu1 %v2479_v42  ;;  %v2721_v42 = vld [vmem:[%s4224_s5] ss:$0 sm:$0xff] }
 0x4ff   : > { %v1459_v27 = vpack.c.bf16 %v1451_v6, %v1451_v6 }
 0x500   : > { %v1420_v24 = vpop.xlane.xlu0 %1419 }
 0x501   : > { %2759 = vrcp.f32 %v1420_v24  ;;  %v1469_v31 = vunpack.c.l.b16 %v1459_v27 }
 0x502   : > { %1634 = vmatpush.bf16.msra.mxu1 %v2478_v43 }
 0x507   : > { %v2760_v26 = vpop.eup %2759 }
 0x508   : > { %v1450_v28 = vmul.f32 %v2760_v26, %v2744_v13 }
 0x50a   : > { %v1458_v30 = vpack.c.bf16 %v1450_v28, %v1450_v28  ;;  %v2719_v28 = vld [vmem:[%s4220_s6] ss:$0 sm:$0xff] }
 0x50c   : > { %v1468_v32 = vunpack.c.l.b16 %v1458_v30 }
 0x50e   : > { %v1470_v33 = vpack.c.b16 %v1469_v31, %v1468_v32 }
 0x510   : > { %2393 = vmatmul.msk.bf16.vlgmr.msrb.gmra.mxu1 %vm1369_vm11, %v1470_v33  ;;  %v2720_v33 = vld [vmem:[%s4221_s18] ss:$0 sm:$0xff] }
 0x547   : > { %v1561_v34 = vpop.f32.mrf.mxu0 }
 0x548   : > { %1592 = vrot.lane.b32.xlu0 %v1561_v34, %s3395_s1 }
 0x54f   : > { %v1563_v35 = vpop.f32.mrf.mxu0 }
 0x550   : > { %1594 = vrot.lane.b32.xlu1 %v1563_v35, %s3395_s1 }
 0x555   : > { %v1511_v36 = vpop.f32.mrf.mxu2 }
 0x556   : > { %1570 = vrot.lane.b32.xlu2 %v1511_v36, %s3396_s15 }
 0x55c   : > { %v1536_v37 = vpop.f32.mrf.mxu3 }
 0x55d   : > { %v1513_v38 = vpop.f32.mrf.mxu2 }
 0x55e   : > { %1581 = vrot.lane.b32.xlu2 %v1536_v37, %s3397_s24 }
 0x564   : > { %v1538_v39 = vpop.f32.mrf.mxu3 }
 0x566   : > { %1572 = vrot.lane.b32.xlu2 %v1513_v38, %s3396_s15 }
 0x56e   : > { %1583 = vrot.lane.b32.xlu2 %v1538_v39, %s3397_s24 }
 0x58d   : > { %v1486_v40 = vpop.f32.mrf.mxu1 }
 0x58e   : > { %1566 = vst.msk [vmem:[#allocation4] sm:$0xff] %vm1267_vm10, %v1486_v40  ;;  %v2483_v40 = vld [vmem:[%s4222_s23 + $0x8] sm:$0xff] }
 0x58f   : > { %1785 = vmatpush.bf16.msra.mxu3 %v2483_v40 }
 0x595   : > { %v1488_v41 = vpop.f32.mrf.mxu1 }
 0x596   : > { %1567 = vst.msk [vmem:[#allocation4 + $0x8] sm:$0xff] %vm1267_vm10, %v1488_v41  ;;  %v2482_v41 = vld [vmem:[%s4223_s28] sm:$0xff] }
 0x597   : > { %1786 = vmatpush.bf16.msra.mxu3 %v2482_v41 }
 0x5b0   : > { %v1571_v44 = vpop.permute.xlu2 %1570 }
 0x5b1   : > { %1577 = vst.msk [vmem:[#allocation4] sm:$0xff] %vm1576_vm12, %v1571_v44 }
 0x5b8   : > { %v1582_v13 = vpop.permute.xlu2 %1581 }
 0x5b9   : > { %1588 = vst.msk [vmem:[#allocation4] sm:$0xff] %vm1587_vm13, %v1582_v13 }
 0x5ba   : > { %v1593_v3 = vpop.permute.xlu0 %1592 }
 0x5bb   : > { %1599 = vst.msk [vmem:[#allocation4] sm:$0xff] %vm1598_vm14, %v1593_v3 }
 0x5c0   : > { %v1573_v21 = vpop.permute.xlu2 %1572 }
 0x5c1   : > { %1578 = vst.msk [vmem:[#allocation4 + $0x8] sm:$0xff] %vm1576_vm12, %v1573_v21 }
 0x5c2   : > { %v1595_v45 = vpop.permute.xlu1 %1594  ;;  %v1601_v46 = vld [vmem:[#allocation4] sm:$0xff] }
 0x5c8   : > { %v1584_v29 = vpop.permute.xlu2 %1583 }
 0x5c9   : > { %1589 = vst.msk [vmem:[#allocation4 + $0x8] sm:$0xff] %vm1587_vm13, %v1584_v29 }
 0x5ca   : > { %1600 = vst.msk [vmem:[#allocation4 + $0x8] sm:$0xff] %vm1598_vm14, %v1595_v45 }
 0x5d1   : > { %v1602_v47 = vld [vmem:[#allocation4 + $0x8] sm:$0xff] }
 0x5d2   : > { %v1603_v48 = vpack.c.bf16 %v1602_v47, %v1601_v46 }
 0x5d4   : > { %2405 = vmatmul.msk.bf16.vlgmr.msra.gmra.mxu1 %vm1127_vm1, %v1603_v48 }
 0x651   : > { %v1636_v50 = vpop.f32.mrf.mxu1 }
 0x652   : > { %v1637_v51 = vadd.f32 %v2718_v49, %v1636_v50 }
 0x654   : > { %v3964_v52 = vadd.f32 %v1637_v51, %v3851_v2 }
 0x656   : > { %v1645_v53 = vsel %vm1127_vm1, %v3964_v52, 0.0 }
 0x657   : > { %1646 = vadd.xlane.f32.xlu2 %v1645_v53 }
 0x659   : > { %v1638_v54 = vpop.f32.mrf.mxu1 }
 0x65a   : > { %v1639_v55 = vadd.f32 %v2718_v49, %v1638_v54 }
 0x65c   : > { %v3969_v56 = vadd.f32 %v1639_v55, %v3855_v4 }
 0x65e   : > { %v1648_v57 = vsel %vm1127_vm1, %v3969_v56, 0.0 }
 0x65f   : > { %1649 = vadd.xlane.f32.xlu0 %v1648_v57 }
 0x6ca   : > { %v1647_v58 = vpop.xlane.xlu2 %1646 }
 0x6cb   : > { %v1651_v59 = vmul.f32 %v1647_v58, %v3859_v12 }
 0x6cd   : > { %v1653_v2 = vsub.f32 %v3964_v52, %v1651_v59 }
 0x6cf   : > { %v1655_v60 = vmul.f32 %v1653_v2, %v1653_v2 }
 0x6d1   : > { %v1657_v61 = vsel %vm1127_vm1, %v1655_v60, 0.0 }
 0x6d2   : > { %v1650_v62 = vpop.xlane.xlu0 %1649  ;;  %1658 = vadd.xlane.f32.xlu1 %v1657_v61 }
 0x6d3   : > { %v1652_v63 = vmul.f32 %v1650_v62, %v3859_v12 }
 0x6d5   : > { %v1654_v4 = vsub.f32 %v3969_v56, %v1652_v63  ;;  %v2722_v63 = vld [vmem:[%s4225_s26] ss:$0 sm:$0xff] }
 0x6d7   : > { %v1656_v0 = vmul.f32 %v1654_v4, %v1654_v4 }
 0x6d9   : > { %v1660_v1 = vsel %vm1127_vm1, %v1656_v0, 0.0 }
 0x6da   : > { %1661 = vadd.xlane.f32.xlu2 %v1660_v1 }
 0x745   : > { %v1659_v7 = vpop.xlane.xlu1 %1658 }
 0x746   : > { %v1663_v8 = vmul.f32 %v1659_v7, %v3859_v12 }
 0x748   : > { %v1665_v10 = vadd.f32 1e-05, %v1663_v8 }
 0x74a   : > { %2761 = vrsqrt.f32 %v1665_v10  ;;  %vm1673_vm0 = vweird.f32 %v1665_v10 }
 0x74d   : > { %v1662_v11 = vpop.xlane.xlu2 %1661 }
 0x74e   : > { %v1664_v14 = vmul.f32 %v1662_v11, %v3859_v12 }
 0x750   : > { %v2762_v15 = vpop.eup %2761  ;;  %v1666_v16 = vadd.f32 1e-05, %v1664_v14 }
 0x751   : > { %v1668_v17 = vmul.f32 %v2762_v15, %v1665_v10  ;;  %vm1674_vm15 = vweird.f32 %v2762_v15 }
 0x752   : > { %2763 = vrsqrt.f32 %v1666_v16  ;;  %vm1675_vm2 = vmor %vm1673_vm0, %vm1674_vm15  ;;  %vm1683_vm4 = vweird.f32 %v1666_v16 }
 0x753   : > { %v1669_v18 = vmul.f32 %v2762_v15, %v1668_v17 }
 0x755   : > { %v1670_v19 = vmul.f32 0.5, %v1669_v18 }
 0x757   : > { %v1671_v20 = vsub.f32 1.5, %v1670_v19 }
 0x758   : > { %v2764_v22 = vpop.eup %2763 }
 0x759   : > { %v1672_v23 = vmul.f32 %v2762_v15, %v1671_v20  ;;  %v1678_v24 = vmul.f32 %v2764_v22, %v1666_v16  ;;  %vm1684_vm3 = vweird.f32 %v2764_v22 }
 0x75a   : > { %vm1685_vm5 = vmor %vm1683_vm4, %vm1684_vm3 }
 0x75b   : > { %v1679_v25 = vmul.f32 %v2764_v22, %v1678_v24  ;;  %v1676_v6 = vsel %vm1675_vm2, %v2762_v15, %v1672_v23 }
 0x75c   : > { %v1687_v30 = vmul.f32 %v1676_v6, %v1653_v2 }
 0x75d   : > { %v1680_v26 = vmul.f32 0.5, %v1679_v25 }
 0x75e   : > { %v1692_v34 = vmul.f32 %v2719_v28, %v1687_v30 }
 0x75f   : > { %v1681_v27 = vsub.f32 1.5, %v1680_v26 }
 0x760   : > { %v1697_v37 = vadd.f32 %v2720_v33, %v1692_v34 }
 0x761   : > { %v1682_v31 = vmul.f32 %v2764_v22, %v1681_v27 }
 0x763   : > { %v1686_v32 = vsel %vm1685_vm5, %v2764_v22, %v1682_v31 }
 0x764   : > { %v1688_v35 = vmul.f32 %v1686_v32, %v1654_v4 }
 0x766   : > { %v1693_v36 = vmul.f32 %v2719_v28, %v1688_v35 }
 0x768   : > { %v1698_v38 = vadd.f32 %v2720_v33, %v1693_v36 }
 0x76a   : > { %v1699_v39 = vpack.c.bf16 %v1698_v38, %v1697_v37 }
 0x76c   : > { %2414 = vmatmul.msk.bf16.vlgmr.msra.gmra.mxu2 %vm1127_vm1, %v1699_v39 }
 0x7ef   : > { %v1732_v43 = vpop.f32.mrf.mxu2 }
 0x7f0   : > { %v1733_v44 = vadd.f32 %v2721_v42, %v1732_v43 }
 0x7f2   : > { %v1739_v13 = vmul.f32 0.044715, %v1733_v44  ;;  %v1737_v58 = vmul.f32 0.5, %v1733_v44 }
 0x7f4   : > { %v1741_v3 = vmul.f32 %v1739_v13, %v1733_v44 }
 0x7f6   : > { %v1743_v21 = vmul.f32 %v1741_v3, %v1733_v44 }
 0x7f7   : > { %v1734_v29 = vpop.f32.mrf.mxu2 }
 0x7f8   : > { %v1745_v45 = vadd.f32 %v1743_v21, %v1733_v44  ;;  %v1735_v46 = vadd.f32 %v2721_v42, %v1734_v29 }
 0x7fa   : > { %v1740_v47 = vmul.f32 0.044715, %v1735_v46  ;;  %v1747_v48 = vmul.f32 0.7978846, %v1745_v45  ;;  %v1738_v59 = vmul.f32 0.5, %v1735_v46 }
 0x7fc   : > { %v1742_v49 = vmul.f32 %v1740_v47, %v1735_v46  ;;  %2765 = vtanh.f32 %v1747_v48 }
 0x7fe   : > { %v1744_v50 = vmul.f32 %v1742_v49, %v1735_v46 }
 0x800   : > { %v1746_v51 = vadd.f32 %v1744_v50, %v1735_v46 }
 0x802   : > { %v1748_v53 = vmul.f32 0.7978846, %v1746_v51  ;;  %v2766_v54 = vpop.eup %2765 }
 0x803   : > { %v1751_v55 = vadd.f32 1.0, %v2766_v54 }
 0x804   : > { %2767 = vtanh.f32 %v1748_v53 }
 0x805   : > { %v1753_v60 = vmul.f32 %v1751_v55, %v1737_v58 }
 0x80a   : > { %v2768_v57 = vpop.eup %2767 }
 0x80b   : > { %v1752_v2 = vadd.f32 1.0, %v2768_v57 }
 0x80d   : > { %v1754_v61 = vmul.f32 %v1752_v2, %v1738_v59 }
 0x80f   : > { %v1755_v62 = vpack.c.bf16 %v1754_v61, %v1753_v60 }
 0x811   : > { %2423 = vmatmul.msk.bf16.vlgmr.msra.gmra.mxu3 %vm1127_vm1, %v1755_v62 }
 0x894   : > { %v1788_v4 = vpop.f32.mrf.mxu3 }
 0x895   : > { %v1789_v0 = vadd.f32 %v2722_v63, %v1788_v4 }
 0x897   : > { %v1793_v1 = vadd.f32 %v1789_v0, %v3964_v52 }
 0x899   : > { %1795 = vst.msk [vmem:[#allocation2] sm:$0xff] %vm1127_vm1, %v1793_v1 }
 0x89c   : > { %v1790_v5 = vpop.f32.mrf.mxu3 }
 0x89d   : > { %v1791_v7 = vadd.f32 %v2722_v63, %v1790_v5  ;;  %1800 = sbr.rel (%p2424_p13) target bundleno = 2789 (0xae5), region = 168 }
 0x89f   : > { %v1794_v8 = vadd.f32 %v1791_v7, %v3969_v56 }
 0x8a1   : > { %1796 = vst.msk [vmem:[#allocation2 + $0x8] sm:$0xff] %vm1127_vm1, %v1794_v8 }
 0x8a2   : > { %v1801_v9 = vld [vmem:[%s3839_s3] sm:$0xff]  ;;  %v1802_v11 = vld [vmem:[%s3839_s3 + $0x8] sm:$0xff]  ;;  %v2493_v53 = vld [vmem:[%s4228_s21 + $0x38] sm:$0xff] }
 0x8a3   : > { %v4005_v10 = vadd.f32 %v1801_v9, %v1793_v1  ;;  %v4010_v14 = vadd.f32 %v1802_v11, %v1794_v8  ;;  %v2485_v6 = vld [vmem:[#allocation25 + $0x8] sm:$0xff]  ;;  %v2484_v27 = vld [vmem:[#allocation25] sm:$0xff]  ;;  %v2770_v47 = vld [vmem:[#allocation23] ss:$0 sm:$0xff]  ;;  %1986 = vmatpush.bf16.msra.mxu1 %v2493_v53 }
 0x8a4   : > { %1891 = vmatpush.bf16.msra.mxu0 %v2485_v6  ;;  %v2492_v54 = vld [vmem:[%s4228_s21 + $0x30] sm:$0xff]  ;;  %v2491_v55 = vld [vmem:[%s4228_s21 + $0x28] sm:$0xff]  ;;  %v2490_v57 = vld [vmem:[%s4228_s21 + $0x20] sm:$0xff] }
 0x8a5   : > { %v1807_v52 = vsel %vm1127_vm1, %v4005_v10, 0.0  ;;  %v1810_v56 = vsel %vm1127_vm1, %v4010_v14, 0.0  ;;  %v2489_v58 = vld [vmem:[%s4228_s21 + $0x18] sm:$0xff]  ;;  %v2488_v59 = vld [vmem:[%s4228_s21 + $0x10] sm:$0xff]  ;;  %v2487_v2 = vld [vmem:[%s4228_s21 + $0x8] sm:$0xff] }
 0x8a6   : > { %1808 = vadd.xlane.f32.xlu0 %v1807_v52  ;;  %v2486_v60 = vld [vmem:[%s4228_s21] sm:$0xff]  ;;  %v2771_v61 = vld [vmem:[#allocation26] ss:$0 sm:$0xff] }
 0x8a7   : > { %1987 = vmatpush.bf16.msra.mxu1 %v2492_v54 }
 0x8a8   : > { %1892 = vmatpush.bf16.msra.mxu0 %v2484_v27 }
 0x8ab   : > { %1988 = vmatpush.bf16.msra.mxu1 %v2491_v55 }
 0x8ae   : > { %1811 = vadd.xlane.f32.xlu0 %v1810_v56 }
 0x8af   : > { %1989 = vmatpush.bf16.msra.mxu1 %v2490_v57 }
 0x8b3   : > { %1990 = vmatpush.bf16.msra.mxu1 %v2489_v58 }
 0x8b7   : > { %1991 = vmatpush.bf16.msra.mxu1 %v2488_v59 }
 0x8bb   : > { %1992 = vmatpush.bf16.msra.mxu1 %v2487_v2 }
 0x8bf   : > { %1993 = vmatpush.bf16.msra.mxu1 %v2486_v60 }
 0x919   : > { %v1809_v15 = vpop.xlane.xlu0 %1808 }
 0x91a   : > { %v1813_v16 = vmul.f32 %v1809_v15, %v3859_v12 }
 0x91c   : > { %v1815_v17 = vsub.f32 %v4005_v10, %v1813_v16 }
 0x91e   : > { %v1817_v18 = vmul.f32 %v1815_v17, %v1815_v17 }
 0x920   : > { %v1819_v19 = vsel %vm1127_vm1, %v1817_v18, 0.0 }
 0x921   : > { %1820 = vadd.xlane.f32.xlu1 %v1819_v19  ;;  %v1812_v20 = vpop.xlane.xlu0 %1811 }
 0x922   : > { %v1814_v22 = vmul.f32 %v1812_v20, %v3859_v12 }
 0x924   : > { %v1816_v23 = vsub.f32 %v4010_v14, %v1814_v22 }
 0x926   : > { %v1818_v24 = vmul.f32 %v1816_v23, %v1816_v23 }
 0x928   : > { %v1822_v25 = vsel %vm1127_vm1, %v1818_v24, 0.0 }
 0x929   : > { %1823 = vadd.xlane.f32.xlu1 %v1822_v25 }
 0x994   : > { %v1821_v26 = vpop.xlane.xlu1 %1820 }
 0x995   : > { %v1825_v28 = vmul.f32 %v1821_v26, %v3859_v12  ;;  %v2772_v26 = vld [vmem:[#allocation28] ss:$0 sm:$0xff] }
 0x997   : > { %v1827_v30 = vadd.f32 1e-05, %v1825_v28 }
 0x999   : > { %2773 = vrsqrt.f32 %v1827_v30  ;;  %vm1835_vm7 = vweird.f32 %v1827_v30 }
 0x99c   : > { %v1824_v31 = vpop.xlane.xlu1 %1823 }
 0x99d   : > { %v1826_v32 = vmul.f32 %v1824_v31, %v3859_v12  ;;  %v2769_v12 = vld [vmem:[%s4227_s29] ss:$0 sm:$0xff] }
 0x99f   : > { %v2774_v33 = vpop.eup %2773  ;;  %v1828_v34 = vadd.f32 1e-05, %v1826_v32 }
 0x9a0   : > { %v1830_v35 = vmul.f32 %v2774_v33, %v1827_v30  ;;  %vm1836_vm6 = vweird.f32 %v2774_v33 }
 0x9a1   : > { %2775 = vrsqrt.f32 %v1828_v34  ;;  %vm1837_vm8 = vmor %vm1835_vm7, %vm1836_vm6  ;;  %vm1845_vm10 = vweird.f32 %v1828_v34 }
 0x9a2   : > { %v1831_v36 = vmul.f32 %v2774_v33, %v1830_v35 }
 0x9a4   : > { %v1832_v37 = vmul.f32 0.5, %v1831_v36 }
 0x9a6   : > { %v1833_v38 = vsub.f32 1.5, %v1832_v37 }
 0x9a7   : > { %v2776_v39 = vpop.eup %2775 }
 0x9a8   : > { %v1834_v40 = vmul.f32 %v2774_v33, %v1833_v38  ;;  %v1840_v41 = vmul.f32 %v2776_v39, %v1828_v34  ;;  %vm1846_vm9 = vweird.f32 %v2776_v39 }
 0x9a9   : > { %vm1847_vm11 = vmor %vm1845_vm10, %vm1846_vm9 }
 0x9aa   : > { %v1841_v42 = vmul.f32 %v2776_v39, %v1840_v41  ;;  %v1838_v44 = vsel %vm1837_vm8, %v2774_v33, %v1834_v40 }
 0x9ab   : > { %v1849_v3 = vmul.f32 %v1838_v44, %v1815_v17 }
 0x9ac   : > { %v1842_v43 = vmul.f32 0.5, %v1841_v42 }
 0x9ad   : > { %v1854_v46 = vmul.f32 %v2769_v12, %v1849_v3 }
 0x9ae   : > { %v1843_v13 = vsub.f32 1.5, %v1842_v43 }
 0x9af   : > { %v1859_v49 = vadd.f32 %v2770_v47, %v1854_v46 }
 0x9b0   : > { %v1844_v21 = vmul.f32 %v2776_v39, %v1843_v13 }
 0x9b2   : > { %v1848_v29 = vsel %vm1847_vm11, %v2776_v39, %v1844_v21 }
 0x9b3   : > { %v1850_v45 = vmul.f32 %v1848_v29, %v1816_v23 }
 0x9b5   : > { %v1855_v48 = vmul.f32 %v2769_v12, %v1850_v45 }
 0x9b7   : > { %v1860_v50 = vadd.f32 %v2770_v47, %v1855_v48 }
 0x9b9   : > { %v1861_v51 = vpack.c.bf16 %v1860_v50, %v1859_v49 }
 0x9bb   : > { %2433 = vmatmul.msk.bf16.vlgmr.msra.gmra.mxu0 %vm1127_vm1, %v1861_v51 }
 0xa38   : > { %v1894_v62 = vpop.f32.mrf.mxu0 }
 0xa39   : > { %v1895_v63 = vadd.f32 %v2771_v61, %v1894_v62 }
 0xa3b   : > { %v1901_v4 = vmul.f32 0.044715, %v1895_v63  ;;  %v1899_v20 = vmul.f32 0.5, %v1895_v63 }
 0xa3d   : > { %v1903_v0 = vmul.f32 %v1901_v4, %v1895_v63 }
 0xa3f   : > { %v1905_v1 = vmul.f32 %v1903_v0, %v1895_v63 }
 0xa40   : > { %v1896_v5 = vpop.f32.mrf.mxu0 }
 0xa41   : > { %v1897_v7 = vadd.f32 %v2771_v61, %v1896_v5  ;;  %v1907_v8 = vadd.f32 %v1905_v1, %v1895_v63 }
 0xa43   : > { %v1902_v9 = vmul.f32 0.044715, %v1897_v7  ;;  %v1909_v52 = vmul.f32 0.7978846, %v1907_v8  ;;  %v1900_v22 = vmul.f32 0.5, %v1897_v7 }
 0xa45   : > { %v1904_v11 = vmul.f32 %v1902_v9, %v1897_v7  ;;  %2777 = vtanh.f32 %v1909_v52 }
 0xa47   : > { %v1906_v56 = vmul.f32 %v1904_v11, %v1897_v7 }
 0xa49   : > { %v1908_v15 = vadd.f32 %v1906_v56, %v1897_v7 }
 0xa4b   : > { %v1910_v16 = vmul.f32 0.7978846, %v1908_v15  ;;  %v2778_v17 = vpop.eup %2777 }
 0xa4c   : > { %v1913_v18 = vadd.f32 1.0, %v2778_v17 }
 0xa4d   : > { %2779 = vtanh.f32 %v1910_v16 }
 0xa4e   : > { %v1915_v24 = vmul.f32 %v1913_v18, %v1899_v20 }
 0xa53   : > { %v2780_v19 = vpop.eup %2779 }
 0xa54   : > { %v1914_v23 = vadd.f32 1.0, %v2780_v19 }
 0xa56   : > { %v1916_v25 = vmul.f32 %v1914_v23, %v1900_v22 }
 0xa58   : > { %v1917_v6 = vpack.c.bf16 %v1916_v25, %v1915_v24 }
 0xa5a   : > { %1994 = vmatmul.bf16.vlgmr.msra.gmra.mxu1 %v1917_v6 }
 0xad7   : > { %v1995_v27 = vpop.f32.mrf.mxu1 }
 0xad8   : > { %v1996_v28 = vadd.f32 %v2772_v26, %v1995_v27 }
 0xada   : > { %v2000_v30 = vadd.f32 %v1996_v28, %v4005_v10 }
 0xadc   : > { %2002 = vst.msk [vmem:[%s3846_s30] sm:$0xff] %vm1127_vm1, %v2000_v30 }
 0xadf   : > { %v1997_v31 = vpop.f32.mrf.mxu1 }
 0xae0   : > { %v1998_v32 = vadd.f32 %v2772_v26, %v1997_v31 }
 0xae2   : > { %v2001_v33 = vadd.f32 %v1998_v32, %v4010_v14 }
 0xae4   : > { %2003 = vst.msk [vmem:[%s3846_s30 + $0x8] sm:$0xff] %vm1127_vm1, %v2001_v33 }
 0xae5 PF: > { %s4229_s1 = sld [smem:[#allocation44_spill]]  ;;  %s2017_s23 = sshll.u32 %s3846_s30, 4  ;;  %s2018_s23 = int_to_ptr.vmem [resolvable:$true] %s2017_s23 }
 0xae6   : > { %s4232_s6 = sld [smem:[#allocation67_spill]]  ;;  %s2005_s5 = scalar_lea.sflag [#allocation7], %s1098_s0 }
 0xaeb   : > { %s2494_s17 = sshll.u32 %s4229_s1, 4 }
 0xaec   : > { %s2016_s18 = scalar_lea.hbm %s4232_s6, %s2494_s17  ;;  %s3251_s29 = scalar_lea.hbm %s4232_s6, 32 }
 0xaed   : > { %s2019_s28 = sshll.u32 %s2016_s18, 4  ;;  %s2020_s28 = int_to_ptr.hbm [resolvable:$true] %s2019_s28 }
 0xaee   : > { %s3245_s26 = sshra.s32 %s2020_s28, 4  ;;  %s3246_s26 = int_to_ptr.hbm [resolvable:$true] %s3245_s26 }
 0xaef   : > { %s3247_s25 = scalar_lea.hbm %s3246_s26, 16  ;;  %p3252_p5 = scmp.lt.s32.totalorder %s3246_s26, %s4232_s6 }
 0xaf0   : > { %p3248_p0 = scmp.ne.s32.totalorder %s3246_s26, %s3247_s25  ;;  %p3253_p6 = scmp.lt.s32.totalorder %s3251_s29, %s3247_s25 }
 0xaf2   : > { %p3249_p1 = pnand %p3248_p0, %p3598_p12  ;;  %p3254_p9 = por %p3253_p6, %p3252_p5 }
 0xaf4   : > { %p3250_p2 = pneg %p3249_p1 }
 0xaf6   : > { %p3255_p10 = pnand %p3254_p9, %p3250_p2 }
 0xaf8   : > { %3258 = shalt.err (!%p3255_p10)
}
 0xaf9   : > { %s3398_s30 = smov 128  }
 0xafa   : > { %2533 = dma.vmem_to_hbm [thread:$0]  (%p3598_p12), %s2018_s23, 256, %s2020_s28, %s2005_s5, %s3398_s30, %s3398_s30, %s3396_s15  }
 0xafb PF: > { %s4233_s0 = sld [smem:[#allocation46_spill]] }
 0xafc   : > { %s4234_s24 = sld [smem:[#allocation39_spill]] }
 0xb01   : > { %p2595_p11 = scmp.ge.s32.totalorder %s4233_s0, 2 }
 0xb02   : > { %s2034_s22 = sand.u32 1, %s4234_s24  }
 0xb03   : > { %p2583_p3 = pnand %p2595_p11, %p3606_p4  ;;  %s2035_s18 = scalar_lea.sflag [#allocation7], %s2034_s22 }
 0xb05   : > { %p2584_p8 = pneg %p2583_p3 }
 0xb07   : > { %3336 = dma.done.wait (%p2584_p8), %s2035_s18, 256  }
 0xb08   : > { %3338 = vsyncadd (%p2584_p8), %s2035_s18, 4294967040  ;;  %s53_s4 = sadd.s32 1, %s4233_s0   ;;  %s4236_s1 = sld [smem:[#allocation40_spill]] }
 0xb09   : > { %p50_p7 = scmp.ge.s32.totalorder %s53_s4, 6   ;;  %s4237_s22 = sld [smem:[#allocation41_spill]] }
 0xb0a   : > { %s4238_s23 = sld [smem:[#allocation52_spill]]  ;;  %s4244_s24 = smov %s3357_s2 }
 0xb0b   : > { %s4239_s15 = sld [smem:[#allocation42_spill]]  ;;  %s4246_s3 = smov %s3373_s27 }
 0xb0c   : > { %s4240_s25 = sld [smem:[#allocation50_spill]] }
 0xb0d   : > { %s4241_s26 = sld [smem:[#allocation45_spill]] }
 0xb0e   : > { %s4242_s14 = sld [smem:[#allocation48_spill]] }
 0xb0f   : > { %s4243_s28 = sld [smem:[#allocation49_spill]] }
 0xb10   :  { %52 = sbr.rel (!%p50_p7) target bundleno = 35 (0x23), region = 295 }
 0xb11   : > { %s4245_s2 = smov %s4239_s15 }
 0xb14   : > { %s4247_s27 = smov %s4242_s14 }
 0xb15   :  { %2041 = vsyncpa [#allocation6], 1 }
 0xb16   :  { %2043 = vsyncpa [#allocation6 + $0x1], 1 }
 0xb17   :  { %2044 = vsyncpa [#allocation9], 1 }
 0xb18   :  { %2046 = vsyncpa [#allocation9 + $0x1], 1 }
 0xb19   :  { %2047 = vsyncpa [#allocation12], 1 }
 0xb1a   :  { %2049 = vsyncpa [#allocation12 + $0x1], 1 }
 0xb1b   :  { %2050 = vsyncpa [#allocation15], 1 }
 0xb1c   :  { %2052 = vsyncpa [#allocation15 + $0x1], 1 }
 0xb1d   :  { %2053 = vsyncpa [#allocation18], 1 }
 0xb1e   :  { %2055 = vsyncpa [#allocation18 + $0x1], 1 }
 0xb1f   :  { %2056 = vsyncpa [#allocation21], 1 }
 0xb20   :  { %2058 = vsyncpa [#allocation21 + $0x1], 1 }
 0xb21   :  { %2059 = vsyncpa [#allocation24], 1 }
 0xb22   :  { %2060 = vsyncpa [#allocation27], 1 }
 0xb23   :  { %2061 = vsyncpa [#allocation7], 1 }
 0xb24   :  { %2063 = vsyncpa [#allocation7 + $0x1], 1 }

</bundles_post_ra>
